<compile_context>
chip_gen: v6e
topology: v6e:2x2x1
jax: 0.10.0
libtpu: 0.0.40
codegen_flags: <defaults>
</compile_context>

<pallas_src>
import jax
import jax.numpy as jnp
from jax.experimental import pallas as pl
from jax.experimental.pallas import tpu as pltpu

LEAKY_SLOPE = 0.01   # nn.LeakyReLU default
BN_EPS = 1e-5        # nn.BatchNorm1d default
LANE = 128           # pad all channel / feature dims to the 128-lane width


def _round_up(n, m):
    return ((n + m - 1) // m) * m


def _pad_to(a, shape):
    pads = [(0, t - s) for s, t in zip(a.shape, shape)]
    return jnp.pad(a, pads)


# ----------------------------------------------------------------------------
# Fused Pallas kernel (factory: static layer geometry & batch baked in)
# ----------------------------------------------------------------------------
def make_encoder_kernel(layer_meta, batch, batch_pad, l_last):
    n_layers = len(layer_meta)
    f32 = jnp.float32

    def bn_lrelu(y, gamma, beta):
        # Training-mode BatchNorm1d over the (batch*length) row axis, biased
        # variance, two-pass (centered) statistics, all in f32.
        inv_n = 1.0 / y.shape[0]
        mean = jnp.sum(y, axis=0, keepdims=True) * inv_n
        cent = y - mean
        var = jnp.sum(cent * cent, axis=0, keepdims=True) * inv_n
        y = cent * jax.lax.rsqrt(var + BN_EPS)
        y = y * gamma + beta
        return jnp.maximum(y, LEAKY_SLOPE * y)          # LeakyReLU, no compare

    def kernel(*refs):
        n_in = 1 + 3 * n_layers + 6
        x_ref = refs[0]
        conv_refs = refs[1:1 + 3 * n_layers]            # (w_taps, gamma, beta)*L
        (wlin_ref, wctx_ref, ctx_ref,
         b1_ref, wh_ref, bh_ref) = refs[1 + 3 * n_layers:n_in]
        o_ref = refs[n_in]
        buf_refs = refs[n_in + 1:]                      # one activation buf / layer

        # Padding rows (and batch-pad rows of the final buffer) must read as
        # exact zeros: zero-init every activation scratch once.
        for br in buf_refs:
            br[...] = jnp.zeros_like(br)

        # ---- conv stack: Conv1d (no bias) + BatchNorm1d(train) + LeakyReLU --
        src = x_ref                                     # zero-row-padded input
        for l in range(n_layers):                       # static unroll
            k = layer_meta[l]["k"]
            s = layer_meta[l]["s"]
            l_pad_in = layer_meta[l]["l_pad_in"]
            l_out = layer_meta[l]["l_out"]
            w_ref = conv_refs[3 * l]
            gamma = conv_refs[3 * l + 1][...]
            beta = conv_refs[3 * l + 2][...]

            # Conv as K tap matmuls; tap operand is a strided sublane slice of
            # the zero-padded activation (replaces the old sel gather matmul).
            per_batch = []
            for b in range(batch):                      # static unroll
                acc = jnp.zeros((l_out, LANE), f32)
                for t in range(k):                      # static unroll
                    patch = src[pl.ds(b * l_pad_in + t, l_out, stride=s), :]
                    acc = acc + jnp.dot(patch, w_ref[t],
                                        preferred_element_type=f32)
                per_batch.append(acc)
            y = jnp.concatenate(per_batch, axis=0) if batch > 1 else per_batch[0]
            y = bn_lrelu(y, gamma, beta)                # [batch*l_out, 128] f32

            # Scatter the real rows into the next zero-padded activation buffer.
            dst = buf_refs[l]
            if l + 1 < n_layers:
                p_next = layer_meta[l + 1]["p"]
                l_pad_next = layer_meta[l + 1]["l_pad_in"]
                for b in range(batch):
                    dst[pl.ds(b * l_pad_next + p_next, l_out), :] = (
                        y[b * l_out:(b + 1) * l_out, :])
            else:
                # final buffer: batch-major rows, batch_pad batches, no padding
                for b in range(batch):
                    dst[pl.ds(b * l_out, l_out), :] = (
                        y[b * l_out:(b + 1) * l_out, :])
            src = dst

        # ---- torch.flatten(start_dim=1) (C-major) + context + lin1 ---------
        acc = jnp.dot(ctx_ref[...], wctx_ref[...], preferred_element_type=f32)
        for j in range(l_last):                         # static unroll
            # rows {b*l_last + j} of the last activation == strided slice
            pos = src[pl.ds(j, batch_pad, stride=l_last), :]   # [batch_pad, 128]
            acc = acc + jnp.dot(pos, wlin_ref[j], preferred_element_type=f32)
        acc = acc + b1_ref[...]
        hid = jnp.maximum(acc, LEAKY_SLOPE * acc)

        # ---- four latent heads fused into one lane-dense [*,128] matmul ----
        # full unmasked [batch_pad, 128] store
        o_ref[...] = jnp.dot(hid, wh_ref[...], preferred_element_type=f32) + bh_ref[...]

    return kernel


def build_apply(params, batch):
    """Bake static geometry (fixed batch, per-layer lengths) and return a
    jitted apply(packed, x, context) -> (style_mu, style_logvar,
    content_mu, content_logvar)."""
    metas = []
    for cp in params["conv"]:
        metas.append(dict(k=cp["k"], s=cp["s"], p=cp["p"],
                          l_pad_in=cp["l_in"] + 2 * cp["p"], l_out=cp["l_out"]))
    n_layers = len(metas)
    l_last = metas[-1]["l_out"]
    batch_pad = max(8, _round_up(batch, 8))             # lane-dense output rows
    kernel = make_encoder_kernel(metas, batch, batch_pad, l_last)

    # activation scratch buffers (f32, zero-padded rows)
    scratch = []
    for l in range(n_layers):
        if l + 1 < n_layers:
            rows = batch * (metas[l]["l_out"] + 2 * metas[l + 1]["p"])
        else:
            rows = batch_pad * metas[l]["l_out"]
        scratch.append(pltpu.VMEM((rows, LANE), jnp.float32))

    p0 = metas[0]["p"]
    l0 = params["conv"][0]["l_in"]
    c_in = params["conv"][0]["c_in"]
    ctx_dim = 2 * params["content_dim"]
    sd, cd = params["style_dim"], params["content_dim"]

    @jax.jit
    def apply(packed, x, context):
        # packed params bake in a fixed batch size / input geometry
        assert x.shape == (batch, c_in, l0), (
            f"encoder was packed for x shape {(batch, c_in, l0)}, got {x.shape}")
        assert context.shape == (batch, ctx_dim)

        # channels-last rows, channels padded to 128 lanes, conv padding
        # realized as p0 zero rows on each side of every batch's sequence.
        x_cl = jnp.transpose(x, (0, 2, 1)).astype(jnp.float32)
        x_cl = jnp.pad(x_cl, ((0, 0), (p0, p0), (0, LANE - c_in)))
        x_rows = x_cl.reshape(batch * (l0 + 2 * p0), LANE)
        ctx = jnp.pad(context.astype(jnp.float32),
                      ((0, batch_pad - batch), (0, LANE - ctx_dim)))

        args = [x_rows]
        for cp in packed["conv"]:
            args += [cp["w"], cp["gamma"], cp["beta"]]
        args += [packed["wlin"], packed["wctx"], ctx, packed["b1"],
                 packed["wh"], packed["bh"]]

        vmem = pl.BlockSpec(memory_space=pltpu.MemorySpace.VMEM)
        out = pl.pallas_call(
            kernel,
            out_shape=jax.ShapeDtypeStruct((batch_pad, LANE), jnp.float32),
            in_specs=[vmem] * len(args),
            out_specs=vmem,
            scratch_shapes=scratch,
        )(*args)

        out = out[:batch]
        return (out[:, :sd], out[:, sd:2 * sd],
                out[:, 2 * sd:2 * sd + cd], out[:, 2 * sd + cd:2 * sd + 2 * cd])

    return apply


# ----------------------------------------------------------------------------
# Parameter construction & packing (static shapes, done once outside jit)
# ----------------------------------------------------------------------------
def init_encoder_params(key, style_dim, content_dim, data_len, in_channels,
                        kernels, strides, paddings, hidden_dims):
    params = {"conv": [], "content_dim": content_dim, "style_dim": style_dim}
    c_in, dl = in_channels, data_len
    for k, s, p, h in zip(kernels, strides, paddings, hidden_dims):
        key, kw = jax.random.split(key)
        w = 0.1 * jax.random.normal(kw, (h, c_in, k), jnp.float32)   # torch OIH
        l_out = 1 + (dl - k + 2 * p) // s
        params["conv"].append(dict(
            w=w, gamma=jnp.ones((h,), jnp.float32), beta=jnp.zeros((h,), jnp.float32),
            k=k, s=s, p=p, c_in=c_in, c_out=h, l_in=dl, l_out=l_out))
        c_in, dl = h, l_out
    mlp_sz = 100
    in_features = hidden_dims[-1] * dl + 2 * content_dim
    key, k1, k2, k3 = jax.random.split(key, 4)
    params["lin1_w"] = 0.1 * jax.random.normal(k1, (in_features, mlp_sz), jnp.float32)
    params["lin1_b"] = 0.1 * jax.random.normal(k2, (mlp_sz,), jnp.float32)
    # heads concatenated column-wise: [style_mu, style_logvar, content_mu, content_logvar]
    head_dims = [style_dim, style_dim, content_dim, content_dim]
    hw, hb, kk = [], [], k3
    for d in head_dims:
        kk, kw_, kb_ = jax.random.split(kk, 3)
        hw.append(0.1 * jax.random.normal(kw_, (mlp_sz, d), jnp.float32))
        hb.append(0.1 * jax.random.normal(kb_, (d,), jnp.float32))
    params["heads_w"] = jnp.concatenate(hw, axis=1)
    params["heads_b"] = jnp.concatenate(hb, axis=0)
    return params


def pack_encoder(params):
    """Pack torch-layout parameters into lane-aligned (128-padded) f32
    operands.  Conv bias is dropped (exactly cancels under training-mode BN).
    gamma/beta MUST be zero-padded beyond the real channels so that BN maps
    the all-zero padded lanes to exactly 0 (asserted below)."""
    packed = {"conv": []}
    for cp in params["conv"]:
        assert cp["c_in"] <= LANE and cp["c_out"] <= LANE
        w = cp["w"]                                     # [C_out, C_in, K]
        taps = jnp.stack([_pad_to(w[:, :, t].T, (LANE, LANE)) for t in range(cp["k"])])
        gamma = _pad_to(cp["gamma"], (LANE,)).reshape(1, LANE)
        beta = _pad_to(cp["beta"], (LANE,)).reshape(1, LANE)
        assert bool(jnp.all(gamma[0, cp["c_out"]:] == 0.0))
        assert bool(jnp.all(beta[0, cp["c_out"]:] == 0.0))
        packed["conv"].append(dict(w=taps.astype(jnp.float32),
                                   gamma=gamma.astype(jnp.float32),
                                   beta=beta.astype(jnp.float32)))

    last = params["conv"][-1]
    c_last, l_last = last["c_out"], last["l_out"]
    lin_w = params["lin1_w"]                            # [C*L + 2*content, 100]
    conv_rows = lin_w[: c_last * l_last, :]             # row f = c*l_last + j
    ctx_rows = lin_w[c_last * l_last:, :]
    assert ctx_rows.shape[0] <= LANE and lin_w.shape[1] <= LANE
    packed["wlin"] = jnp.stack([
        _pad_to(conv_rows[j::l_last, :], (LANE, LANE)) for j in range(l_last)
    ]).astype(jnp.float32)
    packed["wctx"] = _pad_to(ctx_rows, (LANE, LANE)).astype(jnp.float32)
    packed["b1"] = _pad_to(params["lin1_b"], (LANE,)).reshape(1, LANE).astype(jnp.float32)
    packed["wh"] = _pad_to(params["heads_w"], (LANE, LANE)).astype(jnp.float32)
    packed["bh"] = _pad_to(params["heads_b"], (LANE,)).reshape(1, LANE).astype(jnp.float32)
    return packed


# ----------------------------------------------------------------------------
# Pure-JAX f32 reference (semantics of the PyTorch module; conv bias is a
# no-op under training-mode BatchNorm).  HIGHEST precision so it is a true
# f32 baseline.
# ----------------------------------------------------------------------------
def encoder_reference(params, x, context):
    hp = jax.lax.Precision.HIGHEST
    h = x
    for cp in params["conv"]:
        y = jax.lax.conv_general_dilated(
            h, cp["w"], window_strides=(cp["s"],), padding=[(cp["p"], cp["p"])],
            dimension_numbers=("NCH", "OIH", "NCH"), precision=hp)
        mean = jnp.mean(y, axis=(0, 2), keepdims=True)
        var = jnp.mean((y - mean) ** 2, axis=(0, 2), keepdims=True)
        y = (y - mean) * jax.lax.rsqrt(var + BN_EPS)
        y = y * cp["gamma"][None, :, None] + cp["beta"][None, :, None]
        h = jnp.where(y >= 0, y, LEAKY_SLOPE * y)
    flat = h.reshape(h.shape[0], -1)                    # C-major flatten
    flat = jnp.concatenate([flat, context], axis=1)
    z = jnp.dot(flat, params["lin1_w"], precision=hp) + params["lin1_b"]
    z = jnp.where(z >= 0, z, LEAKY_SLOPE * z)
    return jnp.dot(z, params["heads_w"], precision=hp) + params["heads_b"]


# ----------------------------------------------------------------------------
if __name__ == "__main__":
    style_dim, content_dim = 8, 8
    batch, in_channels, data_len = 2, 4, 16
    kernels, strides, paddings, hidden_dims = [3, 3], [2, 2], [1, 1], [8, 16]

    key = jax.random.PRNGKey(0)
    key, kx, kc = jax.random.split(key, 3)
    params = init_encoder_params(key, style_dim, content_dim, data_len,
                                 in_channels, kernels, strides, paddings, hidden_dims)
    packed = pack_encoder(params)
    apply_fn = build_apply(params, batch)

    x = jax.random.normal(kx, (batch, in_channels, data_len), jnp.float32)
    context = jax.random.normal(kc, (batch, 2 * content_dim), jnp.float32)

    outs = apply_fn(packed, x, context)
    outs = jax.block_until_ready(outs)
    s_mu, s_lv, c_mu, c_lv = outs

    assert s_mu.shape == (batch, style_dim)
    assert s_lv.shape == (batch, style_dim)
    assert c_mu.shape == (batch, content_dim)
    assert c_lv.shape == (batch, content_dim)
    assert all(bool(jnp.all(jnp.isfinite(o))) for o in outs)

    # correctness vs f32 reference (f32 end-to-end + two-pass BN -> tightened)
    ref = encoder_reference(params, x, context)
    got = jnp.concatenate(outs, axis=1)
    max_diff = float(jnp.max(jnp.abs(got - ref)))
    assert bool(jnp.allclose(got, ref, atol=5e-2, rtol=5e-2)), (
        f"mismatch vs reference: max abs diff {max_diff}")

    print("KERNEL_OK")
</pallas_src>

<mosaic_0001>
module attributes {stable_mosaic.version = 11 : i64} {
  func.func @kernel(%arg0: memref<36x128xf32, #tpu.memory_space<vmem>>, %arg1: memref<3x128x128xf32, #tpu.memory_space<vmem>>, %arg2: memref<1x128xf32, #tpu.memory_space<vmem>>, %arg3: memref<1x128xf32, #tpu.memory_space<vmem>>, %arg4: memref<3x128x128xf32, #tpu.memory_space<vmem>>, %arg5: memref<1x128xf32, #tpu.memory_space<vmem>>, %arg6: memref<1x128xf32, #tpu.memory_space<vmem>>, %arg7: memref<4x128x128xf32, #tpu.memory_space<vmem>>, %arg8: memref<128x128xf32, #tpu.memory_space<vmem>>, %arg9: memref<8x128xf32, #tpu.memory_space<vmem>>, %arg10: memref<1x128xf32, #tpu.memory_space<vmem>>, %arg11: memref<128x128xf32, #tpu.memory_space<vmem>>, %arg12: memref<1x128xf32, #tpu.memory_space<vmem>>, %arg13: memref<8x128xf32, #tpu.memory_space<vmem>>, %arg14: memref<20x128xf32, #tpu.memory_space<vmem>>, %arg15: memref<32x128xf32, #tpu.memory_space<vmem>>) attributes {dimension_semantics = [], scalar_prefetch = 0 : i64, scratch_operands = 2 : i64, tpu.core_type = #tpu.core_type<tc>} {
    %cst = arith.constant 0.000000e+00 : f32
    %0 = vector.broadcast %cst : f32 to vector<20x128xf32>
    %c0 = arith.constant 0 : index
    %c0_0 = arith.constant 0 : index
    %1 = vector.load %arg14[%c0, %c0_0] : memref<20x128xf32, #tpu.memory_space<vmem>>, vector<20x128xf32>
    tpu.vector_store %arg14[%c0, %c0_0], %0 {strides = array<i32>} : memref<20x128xf32, #tpu.memory_space<vmem>>, vector<20x128xf32>,
    %cst_1 = arith.constant 0.000000e+00 : f32
    %2 = vector.broadcast %cst_1 : f32 to vector<32x128xf32>
    %c0_2 = arith.constant 0 : index
    %c0_3 = arith.constant 0 : index
    %3 = vector.load %arg15[%c0_2, %c0_3] : memref<32x128xf32, #tpu.memory_space<vmem>>, vector<32x128xf32>
    tpu.vector_store %arg15[%c0_2, %c0_3], %2 {strides = array<i32>} : memref<32x128xf32, #tpu.memory_space<vmem>>, vector<32x128xf32>,
    %c0_4 = arith.constant 0 : index
    %c0_5 = arith.constant 0 : index
    %4 = vector.load %arg2[%c0_4, %c0_5] : memref<1x128xf32, #tpu.memory_space<vmem>>, vector<1x128xf32>
    %c0_6 = arith.constant 0 : index
    %c0_7 = arith.constant 0 : index
    %5 = vector.load %arg3[%c0_6, %c0_7] : memref<1x128xf32, #tpu.memory_space<vmem>>, vector<1x128xf32>
    %cst_8 = arith.constant 0.000000e+00 : f32
    %6 = vector.broadcast %cst_8 : f32 to vector<8x128xf32>
    %c0_9 = arith.constant 0 : index
    %c0_10 = arith.constant 0 : index
    %7 = tpu.strided_load %arg0[%c0_9, %c0_10] {strides = array<i32: 2, 1>} : memref<36x128xf32, #tpu.memory_space<vmem>>, vector<8x128xf32>
    %c0_11 = arith.constant 0 : index
    %c0_12 = arith.constant 0 : index
    %c0_13 = arith.constant 0 : index
    %8 = vector.load %arg1[%c0_11, %c0_12, %c0_13] : memref<3x128x128xf32, #tpu.memory_space<vmem>>, vector<1x128x128xf32>
    %9 = vector.shape_cast %8 : vector<1x128x128xf32> to vector<128x128xf32>
    %cst_14 = arith.constant dense<0.000000e+00> : vector<8x128xf32>
    %10 = tpu.matmul %7, %9, %cst_14 {dimension_numbers = #tpu.dot_dimension_numbers<[1], [0], [0], [1], [0, 0, 1, 1], [], []>} : vector<8x128xf32>, vector<128x128xf32>, vector<8x128xf32> -> vector<8x128xf32>
    %11 = arith.addf %6, %10 : vector<8x128xf32>
    %c1 = arith.constant 1 : index
    %c0_15 = arith.constant 0 : index
    %12 = tpu.strided_load %arg0[%c1, %c0_15] {strides = array<i32: 2, 1>} : memref<36x128xf32, #tpu.memory_space<vmem>>, vector<8x128xf32>
    %c1_16 = arith.constant 1 : index
    %c0_17 = arith.constant 0 : index
    %c0_18 = arith.constant 0 : index
    %13 = vector.load %arg1[%c1_16, %c0_17, %c0_18] : memref<3x128x128xf32, #tpu.memory_space<vmem>>, vector<1x128x128xf32>
    %14 = vector.shape_cast %13 : vector<1x128x128xf32> to vector<128x128xf32>
    %cst_19 = arith.constant dense<0.000000e+00> : vector<8x128xf32>
    %15 = tpu.matmul %12, %14, %cst_19 {dimension_numbers = #tpu.dot_dimension_numbers<[1], [0], [0], [1], [0, 0, 1, 1], [], []>} : vector<8x128xf32>, vector<128x128xf32>, vector<8x128xf32> -> vector<8x128xf32>
    %16 = arith.addf %11, %15 : vector<8x128xf32>
    %c2 = arith.constant 2 : index
    %c0_20 = arith.constant 0 : index
    %17 = tpu.strided_load %arg0[%c2, %c0_20] {strides = array<i32: 2, 1>} : memref<36x128xf32, #tpu.memory_space<vmem>>, vector<8x128xf32>
    %c2_21 = arith.constant 2 : index
    %c0_22 = arith.constant 0 : index
    %c0_23 = arith.constant 0 : index
    %18 = vector.load %arg1[%c2_21, %c0_22, %c0_23] : memref<3x128x128xf32, #tpu.memory_space<vmem>>, vector<1x128x128xf32>
    %19 = vector.shape_cast %18 : vector<1x128x128xf32> to vector<128x128xf32>
    %cst_24 = arith.constant dense<0.000000e+00> : vector<8x128xf32>
    %20 = tpu.matmul %17, %19, %cst_24 {dimension_numbers = #tpu.dot_dimension_numbers<[1], [0], [0], [1], [0, 0, 1, 1], [], []>} : vector<8x128xf32>, vector<128x128xf32>, vector<8x128xf32> -> vector<8x128xf32>
    %21 = arith.addf %16, %20 : vector<8x128xf32>
    %cst_25 = arith.constant 0.000000e+00 : f32
    %22 = vector.broadcast %cst_25 : f32 to vector<8x128xf32>
    %c18 = arith.constant 18 : index
    %c0_26 = arith.constant 0 : index
    %23 = tpu.strided_load %arg0[%c18, %c0_26] {strides = array<i32: 2, 1>} : memref<36x128xf32, #tpu.memory_space<vmem>>, vector<8x128xf32>
    %c0_27 = arith.constant 0 : index
    %c0_28 = arith.constant 0 : index
    %c0_29 = arith.constant 0 : index
    %24 = vector.load %arg1[%c0_27, %c0_28, %c0_29] : memref<3x128x128xf32, #tpu.memory_space<vmem>>, vector<1x128x128xf32>
    %25 = vector.shape_cast %24 : vector<1x128x128xf32> to vector<128x128xf32>
    %cst_30 = arith.constant dense<0.000000e+00> : vector<8x128xf32>
    %26 = tpu.matmul %23, %25, %cst_30 {dimension_numbers = #tpu.dot_dimension_numbers<[1], [0], [0], [1], [0, 0, 1, 1], [], []>} : vector<8x128xf32>, vector<128x128xf32>, vector<8x128xf32> -> vector<8x128xf32>
    %27 = arith.addf %22, %26 : vector<8x128xf32>
    %c19 = arith.constant 19 : index
    %c0_31 = arith.constant 0 : index
    %28 = tpu.strided_load %arg0[%c19, %c0_31] {strides = array<i32: 2, 1>} : memref<36x128xf32, #tpu.memory_space<vmem>>, vector<8x128xf32>
    %c1_32 = arith.constant 1 : index
    %c0_33 = arith.constant 0 : index
    %c0_34 = arith.constant 0 : index
    %29 = vector.load %arg1[%c1_32, %c0_33, %c0_34] : memref<3x128x128xf32, #tpu.memory_space<vmem>>, vector<1x128x128xf32>
    %30 = vector.shape_cast %29 : vector<1x128x128xf32> to vector<128x128xf32>
    %cst_35 = arith.constant dense<0.000000e+00> : vector<8x128xf32>
    %31 = tpu.matmul %28, %30, %cst_35 {dimension_numbers = #tpu.dot_dimension_numbers<[1], [0], [0], [1], [0, 0, 1, 1], [], []>} : vector<8x128xf32>, vector<128x128xf32>, vector<8x128xf32> -> vector<8x128xf32>
    %32 = arith.addf %27, %31 : vector<8x128xf32>
    %c20 = arith.constant 20 : index
    %c0_36 = arith.constant 0 : index
    %33 = tpu.strided_load %arg0[%c20, %c0_36] {strides = array<i32: 2, 1>} : memref<36x128xf32, #tpu.memory_space<vmem>>, vector<8x128xf32>
    %c2_37 = arith.constant 2 : index
    %c0_38 = arith.constant 0 : index
    %c0_39 = arith.constant 0 : index
    %34 = vector.load %arg1[%c2_37, %c0_38, %c0_39] : memref<3x128x128xf32, #tpu.memory_space<vmem>>, vector<1x128x128xf32>
    %35 = vector.shape_cast %34 : vector<1x128x128xf32> to vector<128x128xf32>
    %cst_40 = arith.constant dense<0.000000e+00> : vector<8x128xf32>
    %36 = tpu.matmul %33, %35, %cst_40 {dimension_numbers = #tpu.dot_dimension_numbers<[1], [0], [0], [1], [0, 0, 1, 1], [], []>} : vector<8x128xf32>, vector<128x128xf32>, vector<8x128xf32> -> vector<8x128xf32>
    %37 = arith.addf %32, %36 : vector<8x128xf32>
    %38 = tpu.concatenate %21, %37 in 0 : vector<8x128xf32>, vector<8x128xf32> -> vector<16x128xf32>
    %cst_41 = arith.constant dense<0.000000e+00> : vector<128xf32>
    %39 = vector.multi_reduction <add>, %38, %cst_41 [0] : vector<16x128xf32> to vector<128xf32>
    %40 = vector.shape_cast %39 : vector<128xf32> to vector<1x128xf32>
    %cst_42 = arith.constant 6.250000e-02 : f32
    %41 = vector.broadcast %cst_42 : f32 to vector<1x128xf32>
    %42 = arith.mulf %40, %41 : vector<1x128xf32>
    %43 = vector.broadcast %42 : vector<1x128xf32> to vector<16x128xf32>
    %44 = arith.subf %38, %43 : vector<16x128xf32>
    %45 = arith.mulf %44, %44 : vector<16x128xf32>
    %cst_43 = arith.constant dense<0.000000e+00> : vector<128xf32>
    %46 = vector.multi_reduction <add>, %45, %cst_43 [0] : vector<16x128xf32> to vector<128xf32>
    %47 = vector.shape_cast %46 : vector<128xf32> to vector<1x128xf32>
    %cst_44 = arith.constant 6.250000e-02 : f32
    %48 = vector.broadcast %cst_44 : f32 to vector<1x128xf32>
    %49 = arith.mulf %47, %48 : vector<1x128xf32>
    %cst_45 = arith.constant 9.99999974E-6 : f32
    %50 = vector.broadcast %cst_45 : f32 to vector<1x128xf32>
    %51 = arith.addf %49, %50 : vector<1x128xf32>
    %52 = math.rsqrt %51 : vector<1x128xf32>
    %53 = vector.broadcast %52 : vector<1x128xf32> to vector<16x128xf32>
    %54 = arith.mulf %44, %53 : vector<16x128xf32>
    %55 = vector.broadcast %4 : vector<1x128xf32> to vector<16x128xf32>
    %56 = arith.mulf %54, %55 : vector<16x128xf32>
    %57 = vector.broadcast %5 : vector<1x128xf32> to vector<16x128xf32>
    %58 = arith.addf %56, %57 : vector<16x128xf32>
    %cst_46 = arith.constant 0.00999999977 : f32
    %59 = vector.broadcast %cst_46 : f32 to vector<16x128xf32>
    %60 = arith.mulf %59, %58 : vector<16x128xf32>
    %61 = arith.maximumf %58, %60 : vector<16x128xf32>
    %62 = vector.extract_strided_slice %61 {offsets = [0, 0], sizes = [8, 128], strides = [1, 1]} : vector<16x128xf32> to vector<8x128xf32>
    %c1_47 = arith.constant 1 : index
    %c0_48 = arith.constant 0 : index
    %63 = vector.load %arg14[%c1_47, %c0_48] : memref<20x128xf32, #tpu.memory_space<vmem>>, vector<8x128xf32>
    tpu.vector_store %arg14[%c1_47, %c0_48], %62 {strides = array<i32>} : memref<20x128xf32, #tpu.memory_space<vmem>>, vector<8x128xf32>,
    %64 = vector.extract_strided_slice %61 {offsets = [8, 0], sizes = [8, 128], strides = [1, 1]} : vector<16x128xf32> to vector<8x128xf32>
    %c11 = arith.constant 11 : index
    %c0_49 = arith.constant 0 : index
    %65 = vector.load %arg14[%c11, %c0_49] : memref<20x128xf32, #tpu.memory_space<vmem>>, vector<8x128xf32>
    tpu.vector_store %arg14[%c11, %c0_49], %64 {strides = array<i32>} : memref<20x128xf32, #tpu.memory_space<vmem>>, vector<8x128xf32>,
    %c0_50 = arith.constant 0 : index
    %c0_51 = arith.constant 0 : index
    %66 = vector.load %arg5[%c0_50, %c0_51] : memref<1x128xf32, #tpu.memory_space<vmem>>, vector<1x128xf32>
    %c0_52 = arith.constant 0 : index
    %c0_53 = arith.constant 0 : index
    %67 = vector.load %arg6[%c0_52, %c0_53] : memref<1x128xf32, #tpu.memory_space<vmem>>, vector<1x128xf32>
    %cst_54 = arith.constant 0.000000e+00 : f32
    %68 = vector.broadcast %cst_54 : f32 to vector<4x128xf32>
    %c0_55 = arith.constant 0 : index
    %c0_56 = arith.constant 0 : index
    %69 = tpu.strided_load %arg14[%c0_55, %c0_56] {strides = array<i32: 2, 1>} : memref<20x128xf32, #tpu.memory_space<vmem>>, vector<4x128xf32>
    %c0_57 = arith.constant 0 : index
    %c0_58 = arith.constant 0 : index
    %c0_59 = arith.constant 0 : index
    %70 = vector.load %arg4[%c0_57, %c0_58, %c0_59] : memref<3x128x128xf32, #tpu.memory_space<vmem>>, vector<1x128x128xf32>
    %71 = vector.shape_cast %70 : vector<1x128x128xf32> to vector<128x128xf32>
    %cst_60 = arith.constant dense<0.000000e+00> : vector<4x128xf32>
    %72 = tpu.matmul %69, %71, %cst_60 {dimension_numbers = #tpu.dot_dimension_numbers<[1], [0], [0], [1], [0, 0, 1, 1], [], []>} : vector<4x128xf32>, vector<128x128xf32>, vector<4x128xf32> -> vector<4x128xf32>
    %73 = arith.addf %68, %72 : vector<4x128xf32>
    %c1_61 = arith.constant 1 : index
    %c0_62 = arith.constant 0 : index
    %74 = tpu.strided_load %arg14[%c1_61, %c0_62] {strides = array<i32: 2, 1>} : memref<20x128xf32, #tpu.memory_space<vmem>>, vector<4x128xf32>
    %c1_63 = arith.constant 1 : index
    %c0_64 = arith.constant 0 : index
    %c0_65 = arith.constant 0 : index
    %75 = vector.load %arg4[%c1_63, %c0_64, %c0_65] : memref<3x128x128xf32, #tpu.memory_space<vmem>>, vector<1x128x128xf32>
    %76 = vector.shape_cast %75 : vector<1x128x128xf32> to vector<128x128xf32>
    %cst_66 = arith.constant dense<0.000000e+00> : vector<4x128xf32>
    %77 = tpu.matmul %74, %76, %cst_66 {dimension_numbers = #tpu.dot_dimension_numbers<[1], [0], [0], [1], [0, 0, 1, 1], [], []>} : vector<4x128xf32>, vector<128x128xf32>, vector<4x128xf32> -> vector<4x128xf32>
    %78 = arith.addf %73, %77 : vector<4x128xf32>
    %c2_67 = arith.constant 2 : index
    %c0_68 = arith.constant 0 : index
    %79 = tpu.strided_load %arg14[%c2_67, %c0_68] {strides = array<i32: 2, 1>} : memref<20x128xf32, #tpu.memory_space<vmem>>, vector<4x128xf32>
    %c2_69 = arith.constant 2 : index
    %c0_70 = arith.constant 0 : index
    %c0_71 = arith.constant 0 : index
    %80 = vector.load %arg4[%c2_69, %c0_70, %c0_71] : memref<3x128x128xf32, #tpu.memory_space<vmem>>, vector<1x128x128xf32>
    %81 = vector.shape_cast %80 : vector<1x128x128xf32> to vector<128x128xf32>
    %cst_72 = arith.constant dense<0.000000e+00> : vector<4x128xf32>
    %82 = tpu.matmul %79, %81, %cst_72 {dimension_numbers = #tpu.dot_dimension_numbers<[1], [0], [0], [1], [0, 0, 1, 1], [], []>} : vector<4x128xf32>, vector<128x128xf32>, vector<4x128xf32> -> vector<4x128xf32>
    %83 = arith.addf %78, %82 : vector<4x128xf32>
    %cst_73 = arith.constant 0.000000e+00 : f32
    %84 = vector.broadcast %cst_73 : f32 to vector<4x128xf32>
    %c10 = arith.constant 10 : index
    %c0_74 = arith.constant 0 : index
    %85 = tpu.strided_load %arg14[%c10, %c0_74] {strides = array<i32: 2, 1>} : memref<20x128xf32, #tpu.memory_space<vmem>>, vector<4x128xf32>
    %c0_75 = arith.constant 0 : index
    %c0_76 = arith.constant 0 : index
    %c0_77 = arith.constant 0 : index
    %86 = vector.load %arg4[%c0_75, %c0_76, %c0_77] : memref<3x128x128xf32, #tpu.memory_space<vmem>>, vector<1x128x128xf32>
    %87 = vector.shape_cast %86 : vector<1x128x128xf32> to vector<128x128xf32>
    %cst_78 = arith.constant dense<0.000000e+00> : vector<4x128xf32>
    %88 = tpu.matmul %85, %87, %cst_78 {dimension_numbers = #tpu.dot_dimension_numbers<[1], [0], [0], [1], [0, 0, 1, 1], [], []>} : vector<4x128xf32>, vector<128x128xf32>, vector<4x128xf32> -> vector<4x128xf32>
    %89 = arith.addf %84, %88 : vector<4x128xf32>
    %c11_79 = arith.constant 11 : index
    %c0_80 = arith.constant 0 : index
    %90 = tpu.strided_load %arg14[%c11_79, %c0_80] {strides = array<i32: 2, 1>} : memref<20x128xf32, #tpu.memory_space<vmem>>, vector<4x128xf32>
    %c1_81 = arith.constant 1 : index
    %c0_82 = arith.constant 0 : index
    %c0_83 = arith.constant 0 : index
    %91 = vector.load %arg4[%c1_81, %c0_82, %c0_83] : memref<3x128x128xf32, #tpu.memory_space<vmem>>, vector<1x128x128xf32>
    %92 = vector.shape_cast %91 : vector<1x128x128xf32> to vector<128x128xf32>
    %cst_84 = arith.constant dense<0.000000e+00> : vector<4x128xf32>
    %93 = tpu.matmul %90, %92, %cst_84 {dimension_numbers = #tpu.dot_dimension_numbers<[1], [0], [0], [1], [0, 0, 1, 1], [], []>} : vector<4x128xf32>, vector<128x128xf32>, vector<4x128xf32> -> vector<4x128xf32>
    %94 = arith.addf %89, %93 : vector<4x128xf32>
    %c12 = arith.constant 12 : index
    %c0_85 = arith.constant 0 : index
    %95 = tpu.strided_load %arg14[%c12, %c0_85] {strides = array<i32: 2, 1>} : memref<20x128xf32, #tpu.memory_space<vmem>>, vector<4x128xf32>
    %c2_86 = arith.constant 2 : index
    %c0_87 = arith.constant 0 : index
    %c0_88 = arith.constant 0 : index
    %96 = vector.load %arg4[%c2_86, %c0_87, %c0_88] : memref<3x128x128xf32, #tpu.memory_space<vmem>>, vector<1x128x128xf32>
    %97 = vector.shape_cast %96 : vector<1x128x128xf32> to vector<128x128xf32>
    %cst_89 = arith.constant dense<0.000000e+00> : vector<4x128xf32>
    %98 = tpu.matmul %95, %97, %cst_89 {dimension_numbers = #tpu.dot_dimension_numbers<[1], [0], [0], [1], [0, 0, 1, 1], [], []>} : vector<4x128xf32>, vector<128x128xf32>, vector<4x128xf32> -> vector<4x128xf32>
    %99 = arith.addf %94, %98 : vector<4x128xf32>
    %100 = tpu.concatenate %83, %99 in 0 : vector<4x128xf32>, vector<4x128xf32> -> vector<8x128xf32>
    %cst_90 = arith.constant dense<0.000000e+00> : vector<128xf32>
    %101 = vector.multi_reduction <add>, %100, %cst_90 [0] : vector<8x128xf32> to vector<128xf32>
    %102 = vector.shape_cast %101 : vector<128xf32> to vector<1x128xf32>
    %cst_91 = arith.constant 1.250000e-01 : f32
    %103 = vector.broadcast %cst_91 : f32 to vector<1x128xf32>
    %104 = arith.mulf %102, %103 : vector<1x128xf32>
    %105 = vector.broadcast %104 : vector<1x128xf32> to vector<8x128xf32>
    %106 = arith.subf %100, %105 : vector<8x128xf32>
    %107 = arith.mulf %106, %106 : vector<8x128xf32>
    %cst_92 = arith.constant dense<0.000000e+00> : vector<128xf32>
    %108 = vector.multi_reduction <add>, %107, %cst_92 [0] : vector<8x128xf32> to vector<128xf32>
    %109 = vector.shape_cast %108 : vector<128xf32> to vector<1x128xf32>
    %cst_93 = arith.constant 1.250000e-01 : f32
    %110 = vector.broadcast %cst_93 : f32 to vector<1x128xf32>
    %111 = arith.mulf %109, %110 : vector<1x128xf32>
    %cst_94 = arith.constant 9.99999974E-6 : f32
    %112 = vector.broadcast %cst_94 : f32 to vector<1x128xf32>
    %113 = arith.addf %111, %112 : vector<1x128xf32>
    %114 = math.rsqrt %113 : vector<1x128xf32>
    %115 = vector.broadcast %114 : vector<1x128xf32> to vector<8x128xf32>
    %116 = arith.mulf %106, %115 : vector<8x128xf32>
    %117 = vector.broadcast %66 : vector<1x128xf32> to vector<8x128xf32>
    %118 = arith.mulf %116, %117 : vector<8x128xf32>
    %119 = vector.broadcast %67 : vector<1x128xf32> to vector<8x128xf32>
    %120 = arith.addf %118, %119 : vector<8x128xf32>
    %cst_95 = arith.constant 0.00999999977 : f32
    %121 = vector.broadcast %cst_95 : f32 to vector<8x128xf32>
    %122 = arith.mulf %121, %120 : vector<8x128xf32>
    %123 = arith.maximumf %120, %122 : vector<8x128xf32>
    %124 = vector.extract_strided_slice %123 {offsets = [0, 0], sizes = [4, 128], strides = [1, 1]} : vector<8x128xf32> to vector<4x128xf32>
    %c0_96 = arith.constant 0 : index
    %c0_97 = arith.constant 0 : index
    %125 = vector.load %arg15[%c0_96, %c0_97] : memref<32x128xf32, #tpu.memory_space<vmem>>, vector<4x128xf32>
    tpu.vector_store %arg15[%c0_96, %c0_97], %124 {strides = array<i32>} : memref<32x128xf32, #tpu.memory_space<vmem>>, vector<4x128xf32>,
    %126 = vector.extract_strided_slice %123 {offsets = [4, 0], sizes = [4, 128], strides = [1, 1]} : vector<8x128xf32> to vector<4x128xf32>
    %c4 = arith.constant 4 : index
    %c0_98 = arith.constant 0 : index
    %127 = vector.load %arg15[%c4, %c0_98] : memref<32x128xf32, #tpu.memory_space<vmem>>, vector<4x128xf32>
    tpu.vector_store %arg15[%c4, %c0_98], %126 {strides = array<i32>} : memref<32x128xf32, #tpu.memory_space<vmem>>, vector<4x128xf32>,
    %c0_99 = arith.constant 0 : index
    %c0_100 = arith.constant 0 : index
    %128 = vector.load %arg9[%c0_99, %c0_100] : memref<8x128xf32, #tpu.memory_space<vmem>>, vector<8x128xf32>
    %c0_101 = arith.constant 0 : index
    %c0_102 = arith.constant 0 : index
    %129 = vector.load %arg8[%c0_101, %c0_102] : memref<128x128xf32, #tpu.memory_space<vmem>>, vector<128x128xf32>
    %cst_103 = arith.constant dense<0.000000e+00> : vector<8x128xf32>
    %130 = tpu.matmul %128, %129, %cst_103 {dimension_numbers = #tpu.dot_dimension_numbers<[1], [0], [0], [1], [0, 0, 1, 1], [], []>} : vector<8x128xf32>, vector<128x128xf32>, vector<8x128xf32> -> vector<8x128xf32>
    %c0_104 = arith.constant 0 : index
    %c0_105 = arith.constant 0 : index
    %131 = tpu.strided_load %arg15[%c0_104, %c0_105] {strides = array<i32: 4, 1>} : memref<32x128xf32, #tpu.memory_space<vmem>>, vector<8x128xf32>
    %c0_106 = arith.constant 0 : index
    %c0_107 = arith.constant 0 : index
    %c0_108 = arith.constant 0 : index
    %132 = vector.load %arg7[%c0_106, %c0_107, %c0_108] : memref<4x128x128xf32, #tpu.memory_space<vmem>>, vector<1x128x128xf32>
    %133 = vector.shape_cast %132 : vector<1x128x128xf32> to vector<128x128xf32>
    %cst_109 = arith.constant dense<0.000000e+00> : vector<8x128xf32>
    %134 = tpu.matmul %131, %133, %cst_109 {dimension_numbers = #tpu.dot_dimension_numbers<[1], [0], [0], [1], [0, 0, 1, 1], [], []>} : vector<8x128xf32>, vector<128x128xf32>, vector<8x128xf32> -> vector<8x128xf32>
    %135 = arith.addf %130, %134 : vector<8x128xf32>
    %c1_110 = arith.constant 1 : index
    %c0_111 = arith.constant 0 : index
    %136 = tpu.strided_load %arg15[%c1_110, %c0_111] {strides = array<i32: 4, 1>} : memref<32x128xf32, #tpu.memory_space<vmem>>, vector<8x128xf32>
    %c1_112 = arith.constant 1 : index
    %c0_113 = arith.constant 0 : index
    %c0_114 = arith.constant 0 : index
    %137 = vector.load %arg7[%c1_112, %c0_113, %c0_114] : memref<4x128x128xf32, #tpu.memory_space<vmem>>, vector<1x128x128xf32>
    %138 = vector.shape_cast %137 : vector<1x128x128xf32> to vector<128x128xf32>
    %cst_115 = arith.constant dense<0.000000e+00> : vector<8x128xf32>
    %139 = tpu.matmul %136, %138, %cst_115 {dimension_numbers = #tpu.dot_dimension_numbers<[1], [0], [0], [1], [0, 0, 1, 1], [], []>} : vector<8x128xf32>, vector<128x128xf32>, vector<8x128xf32> -> vector<8x128xf32>
    %140 = arith.addf %135, %139 : vector<8x128xf32>
    %c2_116 = arith.constant 2 : index
    %c0_117 = arith.constant 0 : index
    %141 = tpu.strided_load %arg15[%c2_116, %c0_117] {strides = array<i32: 4, 1>} : memref<32x128xf32, #tpu.memory_space<vmem>>, vector<8x128xf32>
    %c2_118 = arith.constant 2 : index
    %c0_119 = arith.constant 0 : index
    %c0_120 = arith.constant 0 : index
    %142 = vector.load %arg7[%c2_118, %c0_119, %c0_120] : memref<4x128x128xf32, #tpu.memory_space<vmem>>, vector<1x128x128xf32>
    %143 = vector.shape_cast %142 : vector<1x128x128xf32> to vector<128x128xf32>
    %cst_121 = arith.constant dense<0.000000e+00> : vector<8x128xf32>
    %144 = tpu.matmul %141, %143, %cst_121 {dimension_numbers = #tpu.dot_dimension_numbers<[1], [0], [0], [1], [0, 0, 1, 1], [], []>} : vector<8x128xf32>, vector<128x128xf32>, vector<8x128xf32> -> vector<8x128xf32>
    %145 = arith.addf %140, %144 : vector<8x128xf32>
    %c3 = arith.constant 3 : index
    %c0_122 = arith.constant 0 : index
    %146 = tpu.strided_load %arg15[%c3, %c0_122] {strides = array<i32: 4, 1>} : memref<32x128xf32, #tpu.memory_space<vmem>>, vector<8x128xf32>
    %c3_123 = arith.constant 3 : index
    %c0_124 = arith.constant 0 : index
    %c0_125 = arith.constant 0 : index
    %147 = vector.load %arg7[%c3_123, %c0_124, %c0_125] : memref<4x128x128xf32, #tpu.memory_space<vmem>>, vector<1x128x128xf32>
    %148 = vector.shape_cast %147 : vector<1x128x128xf32> to vector<128x128xf32>
    %cst_126 = arith.constant dense<0.000000e+00> : vector<8x128xf32>
    %149 = tpu.matmul %146, %148, %cst_126 {dimension_numbers = #tpu.dot_dimension_numbers<[1], [0], [0], [1], [0, 0, 1, 1], [], []>} : vector<8x128xf32>, vector<128x128xf32>, vector<8x128xf32> -> vector<8x128xf32>
    %150 = arith.addf %145, %149 : vector<8x128xf32>
    %c0_127 = arith.constant 0 : index
    %c0_128 = arith.constant 0 : index
    %151 = vector.load %arg10[%c0_127, %c0_128] : memref<1x128xf32, #tpu.memory_space<vmem>>, vector<1x128xf32>
    %152 = vector.broadcast %151 : vector<1x128xf32> to vector<8x128xf32>
    %153 = arith.addf %150, %152 : vector<8x128xf32>
    %cst_129 = arith.constant 0.00999999977 : f32
    %154 = vector.broadcast %cst_129 : f32 to vector<8x128xf32>
    %155 = arith.mulf %154, %153 : vector<8x128xf32>
    %156 = arith.maximumf %153, %155 : vector<8x128xf32>
    %c0_130 = arith.constant 0 : index
    %c0_131 = arith.constant 0 : index
    %157 = vector.load %arg11[%c0_130, %c0_131] : memref<128x128xf32, #tpu.memory_space<vmem>>, vector<128x128xf32>
    %cst_132 = arith.constant dense<0.000000e+00> : vector<8x128xf32>
    %158 = tpu.matmul %156, %157, %cst_132 {dimension_numbers = #tpu.dot_dimension_numbers<[1], [0], [0], [1], [0, 0, 1, 1], [], []>} : vector<8x128xf32>, vector<128x128xf32>, vector<8x128xf32> -> vector<8x128xf32>
    %c0_133 = arith.constant 0 : index
    %c0_134 = arith.constant 0 : index
    %159 = vector.load %arg12[%c0_133, %c0_134] : memref<1x128xf32, #tpu.memory_space<vmem>>, vector<1x128xf32>
    %160 = vector.broadcast %159 : vector<1x128xf32> to vector<8x128xf32>
    %161 = arith.addf %158, %160 : vector<8x128xf32>
    %c0_135 = arith.constant 0 : index
    %c0_136 = arith.constant 0 : index
    %162 = vector.load %arg13[%c0_135, %c0_136] : memref<8x128xf32, #tpu.memory_space<vmem>>, vector<8x128xf32>
    tpu.vector_store %arg13[%c0_135, %c0_136], %161 {strides = array<i32>} : memref<8x128xf32, #tpu.memory_space<vmem>>, vector<8x128xf32>,
    return
  }
}

</mosaic_0001>

<bundles_post_ra>
// kernel: apply.1
= control target key start
LH: loop header
LB: loop body
LE: loop exit
PB: predicated region body
PF: predicated region fallthrough
CT: control target
= control target key end

     0   :  { %18 = vsyncpa [#allocation5], 0  ;;  %s3677_s0 = inlined_call_operand.vmem [shape: f32[36,128], index: 0, kind: input, shape index: {}]   ;;  %s3678_s1 = inlined_call_operand.hbm [shape: f32[3,128,128], index: 1, kind: input, shape index: {}]   ;;  %s3679_s2 = inlined_call_operand.vmem [shape: f32[1,128], index: 2, kind: input, shape index: {}]   ;;  %s3680_s3 = inlined_call_operand.vmem [shape: f32[1,128], index: 3, kind: input, shape index: {}]   ;;  %s3681_s4 = inlined_call_operand.hbm [shape: f32[3,128,128], index: 4, kind: input, shape index: {}]   ;;  %s3682_s5 = inlined_call_operand.vmem [shape: f32[1,128], index: 5, kind: input, shape index: {}]   ;;  %s3683_s6 = inlined_call_operand.vmem [shape: f32[1,128], index: 6, kind: input, shape index: {}]   ;;  %s3684_s7 = inlined_call_operand.hbm [shape: f32[4,128,128], index: 7, kind: input, shape index: {}]   ;;  %s3685_s8 = inlined_call_operand.vmem [shape: f32[128,128], index: 8, kind: input, shape index: {}]   ;;  %s3686_s9 = inlined_call_operand.vmem [shape: f32[8,128], index: 9, kind: input, shape index: {}]   ;;  %s3687_s10 = inlined_call_operand.vmem [shape: f32[1,128], index: 10, kind: input, shape index: {}]   ;;  %s3688_s11 = inlined_call_operand.hbm [shape: f32[128,128], index: 11, kind: input, shape index: {}]   ;;  %s3689_s12 = inlined_call_operand.vmem [shape: f32[1,128], index: 12, kind: input, shape index: {}]   ;;  %s3690_s13 = inlined_call_operand.vmem [shape: f32[8,128], index: 13, kind: output, shape index: {}]  }
   0x1   :  { %19 = vsyncpa [#allocation7], 0 }
   0x2   :  { %20 = vsyncpa [#allocation10], 0  ;;  %s2765_s25 = smov [#allocation6]   ;;  %s2766_s27 = smov [#allocation4]  }
   0x3   :  { %s44_s26 = sshll.u32 %s2765_s25, 4  ;;  %s28_s28 = sshll.u32 %s2766_s27, 4  ;;  %s45_s26 = int_to_ptr.vmem [resolvable:$true] %s44_s26  ;;  %s29_s28 = int_to_ptr.vmem [resolvable:$true] %s28_s28 }
   0x4   :  { %s2687_s29 = scalar_lea.vmem %s45_s26, 6144  ;;  %p2692_p1 = scmp.lt.s32.totalorder %s45_s26, %s45_s26 }
   0x5   :  { %p2688_p0 = scmp.ne.s32.totalorder %s45_s26, %s2687_s29  ;;  %p2693_p2 = scmp.lt.s32.totalorder %s2687_s29, %s2687_s29 }
   0x7   :  { %p2694_p3 = por %p2693_p2, %p2692_p1 }
   0x9   :  { %p2695_p4 = pnand %p2694_p3, %p2688_p0 }
   0xb   :  { %2698 = shalt.err (!%p2695_p4)
}
   0xc   :  { %s2767_s30 = smov 128   ;;  %s2768_s14 = smov 8  }
   0xd   :  { %50 = dma.hbm_to_vmem [thread:$0]  %s3681_s4, 6144, %s45_s26, [#allocation7], %s2767_s30, %s2767_s30, %s2768_s14  }
   0xe   :  { %s2707_s17 = scalar_lea.vmem %s29_s28, 6144  ;;  %p2712_p6 = scmp.lt.s32.totalorder %s29_s28, %s29_s28 }
   0xf   :  { %p2708_p5 = scmp.ne.s32.totalorder %s29_s28, %s2707_s17  ;;  %p2713_p7 = scmp.lt.s32.totalorder %s2707_s17, %s2707_s17 }
  0x11   :  { %p2714_p8 = por %p2713_p7, %p2712_p6 }
  0x13   :  { %p2715_p9 = pnand %p2714_p8, %p2708_p5 }
  0x15   :  { %2718 = shalt.err (!%p2715_p9)
}
  0x16   :  { %34 = dma.hbm_to_vmem [thread:$0]  %s3678_s1, 6144, %s29_s28, [#allocation5], %s2767_s30, %s2767_s30, %s2768_s14  }
  0x17   :  { %s2769_s20 = smov [#allocation8]   ;;  %s2770_s22 = smov [#allocation9]  }
  0x18   :  { %s60_s21 = sshll.u32 %s2769_s20, 4  ;;  %s78_s23 = sshll.u32 %s2770_s22, 4  ;;  %s61_s21 = int_to_ptr.vmem [resolvable:$true] %s60_s21  ;;  %s79_s23 = int_to_ptr.vmem [resolvable:$true] %s78_s23 }
  0x19   :  { %s2727_s4 = scalar_lea.vmem %s61_s21, 8192  ;;  %p2732_p11 = scmp.lt.s32.totalorder %s61_s21, %s61_s21 }
  0x1a   :  { %p2728_p10 = scmp.ne.s32.totalorder %s61_s21, %s2727_s4  ;;  %p2733_p12 = scmp.lt.s32.totalorder %s2727_s4, %s2727_s4 }
  0x1c   :  { %p2734_p13 = por %p2733_p12, %p2732_p11 }
  0x1e   :  { %p2735_p0 = pnand %p2734_p13, %p2728_p10 }
  0x20   :  { %2738 = shalt.err (!%p2735_p0)
}
  0x21   :  { %66 = dma.hbm_to_vmem [thread:$0]  %s3684_s7, 8192, %s61_s21, [#allocation7], %s2767_s30, %s2767_s30, %s2768_s14  }
  0x22   :  { %s2747_s1 = scalar_lea.vmem %s79_s23, 2048  ;;  %p2752_p2 = scmp.lt.s32.totalorder %s79_s23, %s79_s23 }
  0x23   :  { %p2748_p1 = scmp.ne.s32.totalorder %s79_s23, %s2747_s1  ;;  %p2753_p3 = scmp.lt.s32.totalorder %s2747_s1, %s2747_s1 }
  0x25   :  { %p2754_p4 = por %p2753_p3, %p2752_p2 }
  0x27   :  { %p2755_p5 = pnand %p2754_p4, %p2748_p1 }
  0x29   :  { %2758 = shalt.err (!%p2755_p5)
}
  0x2a   :  { %84 = dma.hbm_to_vmem [thread:$0]  %s3688_s11, 2048, %s79_s23, [#allocation10], %s2767_s30, %s2767_s30, %s2768_s14  }
  0x2b   :  { %2759 = dma.done.wait [#allocation5], 6144  }
  0x2c   :  { %2760 = vsyncadd [#allocation5], 4294961152 }
  0x2d   :  { %2761 = dma.done.wait [#allocation7], 14336  }
  0x2e   :  { %2762 = vsyncadd [#allocation7], 4294952960 }
  0x2f   :  { %2763 = dma.done.wait [#allocation10], 2048  }
  0x30   :  { %2764 = vsyncadd [#allocation10], 4294965248  ;;  %v2771_v0 = vmov 0.0   ;;  %vm2772_vm0 = vmmov 0   ;;  %v2880_v1 = vld [vmem:[#allocation4 + $0xf8] sm:$0xff]  ;;  %v2884_v3 = vld [vmem:[#allocation4 + $0xf0] sm:$0xff] }
  0x31   :  { %2036 = vmatprep.subr.mxu0 %v2771_v0  ;;  %99 = vst [vmem:[#allocation2] sm:$0xff] %v2771_v0  ;;  %100 = vst [vmem:[#allocation2 + $0x8] sm:$0xff] %v2771_v0  ;;  %2071 = vmatprep.subr.mxu1 %v2771_v0  ;;  %v2882_v2 = vld [vmem:[#allocation4 + $0x78] sm:$0xff]  ;;  %v2888_v4 = vld [vmem:[#allocation4 + $0x70] sm:$0xff]  ;;  %vm1125_vm1 = vcmask 1043456  }
  0x32   :  { %101 = vst [vmem:[#allocation2 + $0x10] sm:$0xf] %v2771_v0  ;;  %102 = vst [vmem:[#allocation3] sm:$0xff] %v2771_v0  ;;  %2068 = vmatprep.mubr.msk.f32.mxu0 %vm2772_vm0, %v2771_v0  ;;  %2103 = vmatprep.mubr.msk.f32.mxu1 %vm2772_vm0, %v2771_v0  ;;  %v2892_v5 = vld [vmem:[#allocation4 + $0xe8] sm:$0xff]  ;;  %v2900_v7 = vld [vmem:[#allocation4 + $0xe0] sm:$0xff] }
  0x33   :  { %103 = vst [vmem:[#allocation3 + $0x8] sm:$0xff] %v2771_v0  ;;  %104 = vst [vmem:[#allocation3 + $0x10] sm:$0xff] %v2771_v0  ;;  %2037 = vmatpush3.msra.mxu0 %v2880_v1  ;;  %2072 = vmatpush3.msra.mxu1 %v2882_v2  ;;  %v2894_v6 = vld [vmem:[#allocation4 + $0x68] sm:$0xff]  ;;  %v2902_v8 = vld [vmem:[#allocation4 + $0x60] sm:$0xff] }
  0x34   :  { %105 = vst [vmem:[#allocation3 + $0x18] sm:$0xff] %v2771_v0  ;;  %2038 = vmatprep.subr.mxu0 %v2771_v0  ;;  %2073 = vmatprep.subr.mxu1 %v2771_v0  ;;  %v2908_v9 = vld [vmem:[#allocation4 + $0xd8] sm:$0xff]  ;;  %v2916_v11 = vld [vmem:[#allocation4 + $0xd0] sm:$0xff]  ;;  %v2924_v13 = vld [vmem:[#allocation4 + $0xc8] sm:$0xff] }
  0x35   :  { %2039 = vmatpush3.msra.mxu0 %v2884_v3  ;;  %2074 = vmatpush3.msra.mxu1 %v2888_v4  ;;  %v2910_v10 = vld [vmem:[#allocation4 + $0x58] sm:$0xff]  ;;  %v2918_v12 = vld [vmem:[#allocation4 + $0x50] sm:$0xff]  ;;  %v2926_v14 = vld [vmem:[#allocation4 + $0x48] sm:$0xff] }
  0x36   :  { %2040 = vmatprep.subr.mxu0 %v2771_v0  ;;  %2075 = vmatprep.subr.mxu1 %v2771_v0  ;;  %v2932_v15 = vld [vmem:[#allocation4 + $0xc0] sm:$0xff]  ;;  %v2940_v17 = vld [vmem:[#allocation4 + $0xb8] sm:$0xff]  ;;  %v2948_v19 = vld [vmem:[#allocation4 + $0xb0] sm:$0xff] }
  0x37   :  { %2041 = vmatpush3.msra.mxu0 %v2892_v5  ;;  %2076 = vmatpush3.msra.mxu1 %v2894_v6  ;;  %v2934_v16 = vld [vmem:[#allocation4 + $0x40] sm:$0xff]  ;;  %v2942_v18 = vld [vmem:[#allocation4 + $0x38] sm:$0xff]  ;;  %v2950_v20 = vld [vmem:[#allocation4 + $0x30] sm:$0xff] }
  0x38   :  { %2042 = vmatprep.subr.mxu0 %v2771_v0  ;;  %2077 = vmatprep.subr.mxu1 %v2771_v0  ;;  %v2956_v21 = vld [vmem:[#allocation4 + $0xa8] sm:$0xff]  ;;  %v2964_v23 = vld [vmem:[#allocation4 + $0xa0] sm:$0xff]  ;;  %v2972_v25 = vld [vmem:[#allocation4 + $0x98] sm:$0xff] }
  0x39   :  { %2043 = vmatpush3.msra.mxu0 %v2900_v7  ;;  %2078 = vmatpush3.msra.mxu1 %v2902_v8  ;;  %v2958_v22 = vld [vmem:[#allocation4 + $0x28] sm:$0xff]  ;;  %v2966_v24 = vld [vmem:[#allocation4 + $0x20] sm:$0xff]  ;;  %v2974_v26 = vld [vmem:[#allocation4 + $0x18] sm:$0xff] }
  0x3a   :  { %2044 = vmatprep.subr.mxu0 %v2771_v0  ;;  %2079 = vmatprep.subr.mxu1 %v2771_v0  ;;  %v2980_v27 = vld [vmem:[#allocation4 + $0x90] sm:$0xff]  ;;  %v2988_v29 = vld [vmem:[#allocation4 + $0x88] sm:$0xff]  ;;  %v2996_v31 = vld [vmem:[#allocation4 + $0x80] sm:$0xff] }
  0x3b   :  { %2045 = vmatpush3.msra.mxu0 %v2908_v9  ;;  %2080 = vmatpush3.msra.mxu1 %v2910_v10  ;;  %v2982_v28 = vld [vmem:[#allocation4 + $0x10] sm:$0xff]  ;;  %v2990_v30 = vld [vmem:[#allocation4 + $0x8] sm:$0xff]  ;;  %v2998_v32 = vld [vmem:[#allocation4] sm:$0xff] }
  0x3c   :  { %2046 = vmatprep.subr.mxu0 %v2771_v0  ;;  %2081 = vmatprep.subr.mxu1 %v2771_v0  ;;  %v1719_v33 = vld [vmem:[%s3677_s0 + $0x1] ss:$2 sm:$0xff]  ;;  %v108_v34 = vld [vmem:[%s3677_s0] ss:$2 sm:$0xff]  ;;  %v3012_v35 = vld [vmem:[#allocation4 + $0x178] sm:$0xff] }
  0x3d   :  { %2047 = vmatpush3.msra.mxu0 %v2916_v11  ;;  %2082 = vmatpush3.msra.mxu1 %v2918_v12  ;;  %v3016_v36 = vld [vmem:[#allocation4 + $0x170] sm:$0xff]  ;;  %v3022_v37 = vld [vmem:[#allocation4 + $0x168] sm:$0xff]  ;;  %v3028_v38 = vld [vmem:[#allocation4 + $0x160] sm:$0xff] }
  0x3e   :  { %2048 = vmatprep.subr.mxu0 %v2771_v0  ;;  %2083 = vmatprep.subr.mxu1 %v2771_v0  ;;  %v3034_v39 = vld [vmem:[#allocation4 + $0x158] sm:$0xff]  ;;  %v3040_v40 = vld [vmem:[#allocation4 + $0x150] sm:$0xff]  ;;  %v3046_v41 = vld [vmem:[#allocation4 + $0x148] sm:$0xff] }
  0x3f   :  { %2049 = vmatpush3.msra.mxu0 %v2924_v13  ;;  %2084 = vmatpush3.msra.mxu1 %v2926_v14  ;;  %v3052_v42 = vld [vmem:[#allocation4 + $0x140] sm:$0xff]  ;;  %v3058_v43 = vld [vmem:[#allocation4 + $0x138] sm:$0xff]  ;;  %v3064_v44 = vld [vmem:[#allocation4 + $0x130] sm:$0xff] }
  0x40   :  { %2050 = vmatprep.subr.mxu0 %v2771_v0  ;;  %2085 = vmatprep.subr.mxu1 %v2771_v0  ;;  %v3070_v45 = vld [vmem:[#allocation4 + $0x128] sm:$0xff]  ;;  %v3076_v46 = vld [vmem:[#allocation4 + $0x120] sm:$0xff]  ;;  %v3082_v47 = vld [vmem:[#allocation4 + $0x118] sm:$0xff] }
  0x41   :  { %2051 = vmatpush3.msra.mxu0 %v2932_v15  ;;  %2086 = vmatpush3.msra.mxu1 %v2934_v16  ;;  %v3088_v48 = vld [vmem:[#allocation4 + $0x110] sm:$0xff]  ;;  %v3094_v49 = vld [vmem:[#allocation4 + $0x108] sm:$0xff]  ;;  %v3100_v50 = vld [vmem:[#allocation4 + $0x100] sm:$0xff] }
  0x42   :  { %2052 = vmatprep.subr.mxu0 %v2771_v0  ;;  %2087 = vmatprep.subr.mxu1 %v2771_v0  ;;  %v1720_v51 = vld [vmem:[%s3677_s0 + $0x2] ss:$2 sm:$0xff]  ;;  %v1722_v52 = vld [vmem:[%s3677_s0 + $0x13] ss:$2 sm:$0xff]  ;;  %v1721_v53 = vld [vmem:[%s3677_s0 + $0x12] ss:$2 sm:$0xff] }
  0x43   :  { %2053 = vmatpush3.msra.mxu0 %v2940_v17  ;;  %2088 = vmatpush3.msra.mxu1 %v2942_v18  ;;  %v1723_v54 = vld [vmem:[%s3677_s0 + $0x14] ss:$2 sm:$0xff]  ;;  %v3206_v57 = vld [vmem:[#allocation6 + $0xf0] sm:$0xff] }
  0x44   :  { %2054 = vmatprep.subr.mxu0 %v2771_v0  ;;  %2089 = vmatprep.subr.mxu1 %v2771_v0  ;;  %v3198_v55 = vld [vmem:[#allocation6 + $0xf8] sm:$0xff]  ;;  %v3208_v58 = vld [vmem:[#allocation6 + $0x70] sm:$0xff]  ;;  %v3214_v59 = vld [vmem:[#allocation6 + $0xe8] sm:$0xff] }
  0x45   :  { %2055 = vmatpush3.msra.mxu0 %v2948_v19  ;;  %2090 = vmatpush3.msra.mxu1 %v2950_v20  ;;  %v3200_v56 = vld [vmem:[#allocation6 + $0x78] sm:$0xff]  ;;  %v3216_v60 = vld [vmem:[#allocation6 + $0x68] sm:$0xff]  ;;  %v3222_v61 = vld [vmem:[#allocation6 + $0xe0] sm:$0xff] }
  0x46   :  { %2056 = vmatprep.subr.mxu0 %v2771_v0  ;;  %2091 = vmatprep.subr.mxu1 %v2771_v0  ;;  %v3224_v62 = vld [vmem:[#allocation6 + $0x60] sm:$0xff]  ;;  %v3230_v63 = vld [vmem:[#allocation6 + $0xd8] sm:$0xff] }
  0x47   :  { %2057 = vmatpush3.msra.mxu0 %v2956_v21  ;;  %2092 = vmatpush3.msra.mxu1 %v2958_v22 }
  0x48   :  { %2058 = vmatprep.subr.mxu0 %v2771_v0  ;;  %2093 = vmatprep.subr.mxu1 %v2771_v0 }
  0x49   :  { %2059 = vmatpush3.msra.mxu0 %v2964_v23  ;;  %2094 = vmatpush3.msra.mxu1 %v2966_v24 }
  0x4a   :  { %2060 = vmatprep.subr.mxu0 %v2771_v0  ;;  %2095 = vmatprep.subr.mxu1 %v2771_v0 }
  0x4b   :  { %2061 = vmatpush3.msra.mxu0 %v2972_v25  ;;  %2096 = vmatpush3.msra.mxu1 %v2974_v26 }
  0x4c   :  { %2062 = vmatprep.subr.mxu0 %v2771_v0  ;;  %2097 = vmatprep.subr.mxu1 %v2771_v0 }
  0x4d   :  { %2063 = vmatpush3.msra.mxu0 %v2980_v27  ;;  %2098 = vmatpush3.msra.mxu1 %v2982_v28 }
  0x4e   :  { %2064 = vmatprep.subr.mxu0 %v2771_v0  ;;  %2099 = vmatprep.subr.mxu1 %v2771_v0 }
  0x4f   :  { %2065 = vmatpush3.msra.mxu0 %v2988_v29  ;;  %2100 = vmatpush3.msra.mxu1 %v2990_v30 }
  0x50   :  { %2066 = vmatprep.subr.mxu0 %v2771_v0  ;;  %2101 = vmatprep.subr.mxu1 %v2771_v0 }
  0x51   :  { %2067 = vmatpush3.msra.mxu0 %v2996_v31  ;;  %2102 = vmatpush3.msra.mxu1 %v2998_v32 }
  0x52   :  { %2069 = vmatmul.mubr.f32.vlgmr.msra.gmra.mxu0 %v1719_v33  ;;  %2106 = vmatprep.subr.mxu0 %v2771_v0 }
  0x53   :  { %2141 = vmatprep.subr.mxu1 %v2771_v0  ;;  %2104 = vmatmul.mubr.f32.vlgmr.msra.gmra.mxu1 %v108_v34 }
  0x54   :  { %2107 = vmatpush3.msra.mxu0 %v3012_v35  ;;  %2142 = vmatpush3.msra.mxu1 %v2880_v1  ;;  %v3232_v1 = vld [vmem:[#allocation6 + $0x58] sm:$0xff] }
  0x55   :  { %2108 = vmatprep.subr.mxu0 %v2771_v0  ;;  %2143 = vmatprep.subr.mxu1 %v2771_v0 }
  0x56   :  { %2109 = vmatpush3.msra.mxu0 %v3016_v36  ;;  %2144 = vmatpush3.msra.mxu1 %v2884_v3  ;;  %v3240_v3 = vld [vmem:[#allocation6 + $0x50] sm:$0xff] }
  0x57   :  { %2110 = vmatprep.subr.mxu0 %v2771_v0  ;;  %2145 = vmatprep.subr.mxu1 %v2771_v0 }
  0x58   :  { %2111 = vmatpush3.msra.mxu0 %v3022_v37  ;;  %2146 = vmatpush3.msra.mxu1 %v2892_v5  ;;  %v3248_v5 = vld [vmem:[#allocation6 + $0x48] sm:$0xff] }
  0x59   :  { %2112 = vmatprep.subr.mxu0 %v2771_v0  ;;  %2147 = vmatprep.subr.mxu1 %v2771_v0 }
  0x5a   :  { %2113 = vmatpush3.msra.mxu0 %v3028_v38  ;;  %2148 = vmatpush3.msra.mxu1 %v2900_v7  ;;  %v3256_v7 = vld [vmem:[#allocation6 + $0x40] sm:$0xff] }
  0x5b   :  { %2114 = vmatprep.subr.mxu0 %v2771_v0  ;;  %2149 = vmatprep.subr.mxu1 %v2771_v0 }
  0x5c   :  { %2115 = vmatpush3.msra.mxu0 %v3034_v39  ;;  %2150 = vmatpush3.msra.mxu1 %v2908_v9  ;;  %v3264_v9 = vld [vmem:[#allocation6 + $0x38] sm:$0xff] }
  0x5d   :  { %2116 = vmatprep.subr.mxu0 %v2771_v0  ;;  %2151 = vmatprep.subr.mxu1 %v2771_v0 }
  0x5e   :  { %2117 = vmatpush3.msra.mxu0 %v3040_v40  ;;  %2152 = vmatpush3.msra.mxu1 %v2916_v11  ;;  %v3270_v11 = vld [vmem:[#allocation6 + $0xb0] sm:$0xff] }
  0x5f   :  { %2118 = vmatprep.subr.mxu0 %v2771_v0  ;;  %2153 = vmatprep.subr.mxu1 %v2771_v0 }
  0x60   :  { %2119 = vmatpush3.msra.mxu0 %v3046_v41  ;;  %2154 = vmatpush3.msra.mxu1 %v2924_v13 }
  0x61   :  { %2120 = vmatprep.subr.mxu0 %v2771_v0  ;;  %2155 = vmatprep.subr.mxu1 %v2771_v0 }
  0x62   :  { %2121 = vmatpush3.msra.mxu0 %v3052_v42  ;;  %2156 = vmatpush3.msra.mxu1 %v2932_v15 }
  0x63   :  { %2122 = vmatprep.subr.mxu0 %v2771_v0  ;;  %2157 = vmatprep.subr.mxu1 %v2771_v0 }
  0x64   :  { %2123 = vmatpush3.msra.mxu0 %v3058_v43  ;;  %2158 = vmatpush3.msra.mxu1 %v2940_v17  ;;  %v3280_v17 = vld [vmem:[#allocation6 + $0x28] sm:$0xff] }
  0x65   :  { %2124 = vmatprep.subr.mxu0 %v2771_v0  ;;  %2159 = vmatprep.subr.mxu1 %v2771_v0 }
  0x66   :  { %2125 = vmatpush3.msra.mxu0 %v3064_v44  ;;  %2160 = vmatpush3.msra.mxu1 %v2948_v19  ;;  %v3286_v19 = vld [vmem:[#allocation6 + $0xa0] sm:$0xff] }
  0x67   :  { %2126 = vmatprep.subr.mxu0 %v2771_v0  ;;  %2161 = vmatprep.subr.mxu1 %v2771_v0 }
  0x68   :  { %2127 = vmatpush3.msra.mxu0 %v3070_v45  ;;  %2162 = vmatpush3.msra.mxu1 %v2956_v21  ;;  %v3294_v21 = vld [vmem:[#allocation6 + $0x98] sm:$0xff] }
  0x69   :  { %2128 = vmatprep.subr.mxu0 %v2771_v0  ;;  %2163 = vmatprep.subr.mxu1 %v2771_v0 }
  0x6a   :  { %2129 = vmatpush3.msra.mxu0 %v3076_v46  ;;  %2164 = vmatpush3.msra.mxu1 %v2964_v23  ;;  %v3300_v23 = vld [vmem:[#allocation6 + $0x90] sm:$0xff] }
  0x6b   :  { %2130 = vmatprep.subr.mxu0 %v2771_v0  ;;  %2165 = vmatprep.subr.mxu1 %v2771_v0 }
  0x6c   :  { %2131 = vmatpush3.msra.mxu0 %v3082_v47  ;;  %2166 = vmatpush3.msra.mxu1 %v2972_v25  ;;  %v3306_v25 = vld [vmem:[#allocation6 + $0x88] sm:$0xff] }
  0x6d   :  { %2132 = vmatprep.subr.mxu0 %v2771_v0  ;;  %2167 = vmatprep.subr.mxu1 %v2771_v0 }
  0x6e   :  { %2133 = vmatpush3.msra.mxu0 %v3088_v48  ;;  %2168 = vmatpush3.msra.mxu1 %v2980_v27  ;;  %v3314_v27 = vld [vmem:[#allocation6 + $0x80] sm:$0xff] }
  0x6f   :  { %2134 = vmatprep.subr.mxu0 %v2771_v0  ;;  %2169 = vmatprep.subr.mxu1 %v2771_v0 }
  0x70   :  { %2135 = vmatpush3.msra.mxu0 %v3094_v49  ;;  %2170 = vmatpush3.msra.mxu1 %v2988_v29 }
  0x71   :  { %2136 = vmatprep.subr.mxu0 %v2771_v0  ;;  %2171 = vmatprep.subr.mxu1 %v2771_v0 }
  0x72   :  { %2137 = vmatpush3.msra.mxu0 %v3100_v50  ;;  %2138 = vmatprep.mubr.msk.f32.mxu0 %vm2772_vm0, %v2771_v0 }
  0x73   :  { %2172 = vmatpush3.msra.mxu1 %v2996_v31  ;;  %2139 = vmatmul.mubr.f32.vlgmr.msra.gmra.mxu0 %v1720_v51 }
  0x74   :  { %2173 = vmatprep.mubr.msk.f32.mxu1 %vm2772_vm0, %v2771_v0  ;;  %2176 = vmatprep.subr.mxu0 %v2771_v0 }
  0x75   :  { %2211 = vmatprep.subr.mxu1 %v2771_v0  ;;  %2174 = vmatmul.mubr.f32.vlgmr.msra.gmra.mxu1 %v1722_v52 }
  0x76   :  { %2177 = vmatpush3.msra.mxu0 %v2882_v2  ;;  %2212 = vmatpush3.msra.mxu1 %v3012_v35  ;;  %v3238_v2 = vld [vmem:[#allocation6 + $0xd0] sm:$0xff] }
  0x77   :  { %2178 = vmatprep.subr.mxu0 %v2771_v0  ;;  %2213 = vmatprep.subr.mxu1 %v2771_v0 }
  0x78   :  { %2179 = vmatpush3.msra.mxu0 %v2888_v4  ;;  %2214 = vmatpush3.msra.mxu1 %v3016_v36  ;;  %v3246_v4 = vld [vmem:[#allocation6 + $0xc8] sm:$0xff] }
  0x79   :  { %2180 = vmatprep.subr.mxu0 %v2771_v0  ;;  %2215 = vmatprep.subr.mxu1 %v2771_v0 }
  0x7a   :  { %2181 = vmatpush3.msra.mxu0 %v2894_v6  ;;  %2216 = vmatpush3.msra.mxu1 %v3022_v37  ;;  %v3254_v6 = vld [vmem:[#allocation6 + $0xc0] sm:$0xff] }
  0x7b   :  { %2182 = vmatprep.subr.mxu0 %v2771_v0  ;;  %2217 = vmatprep.subr.mxu1 %v2771_v0 }
  0x7c   :  { %2183 = vmatpush3.msra.mxu0 %v2902_v8  ;;  %2218 = vmatpush3.msra.mxu1 %v3028_v38  ;;  %v3262_v8 = vld [vmem:[#allocation6 + $0xb8] sm:$0xff] }
  0x7d   :  { %2184 = vmatprep.subr.mxu0 %v2771_v0  ;;  %2219 = vmatprep.subr.mxu1 %v2771_v0 }
  0x7e   :  { %2185 = vmatpush3.msra.mxu0 %v2910_v10  ;;  %2220 = vmatpush3.msra.mxu1 %v3034_v39 }
  0x7f   :  { %2186 = vmatprep.subr.mxu0 %v2771_v0  ;;  %2221 = vmatprep.subr.mxu1 %v2771_v0 }
  0x80   :  { %2187 = vmatpush3.msra.mxu0 %v2918_v12  ;;  %2222 = vmatpush3.msra.mxu1 %v3040_v40  ;;  %v3272_v12 = vld [vmem:[#allocation6 + $0x30] sm:$0xff] }
  0x81   :  { %2188 = vmatprep.subr.mxu0 %v2771_v0  ;;  %2223 = vmatprep.subr.mxu1 %v2771_v0 }
  0x82   :  { %2189 = vmatpush3.msra.mxu0 %v2926_v14  ;;  %2224 = vmatpush3.msra.mxu1 %v3046_v41 }
  0x83   :  { %2190 = vmatprep.subr.mxu0 %v2771_v0  ;;  %2225 = vmatprep.subr.mxu1 %v2771_v0 }
  0x84   :  { %2191 = vmatpush3.msra.mxu0 %v2934_v16  ;;  %2226 = vmatpush3.msra.mxu1 %v3052_v42  ;;  %v3278_v16 = vld [vmem:[#allocation6 + $0xa8] sm:$0xff] }
  0x85   :  { %2192 = vmatprep.subr.mxu0 %v2771_v0  ;;  %2227 = vmatprep.subr.mxu1 %v2771_v0 }
  0x86   :  { %2193 = vmatpush3.msra.mxu0 %v2942_v18  ;;  %2228 = vmatpush3.msra.mxu1 %v3058_v43 }
  0x87   :  { %2194 = vmatprep.subr.mxu0 %v2771_v0  ;;  %2229 = vmatprep.subr.mxu1 %v2771_v0 }
  0x88   :  { %2195 = vmatpush3.msra.mxu0 %v2950_v20  ;;  %2230 = vmatpush3.msra.mxu1 %v3064_v44  ;;  %v3288_v20 = vld [vmem:[#allocation6 + $0x20] sm:$0xff] }
  0x89   :  { %2196 = vmatprep.subr.mxu0 %v2771_v0  ;;  %2231 = vmatprep.subr.mxu1 %v2771_v0 }
  0x8a   :  { %2197 = vmatpush3.msra.mxu0 %v2958_v22  ;;  %2232 = vmatpush3.msra.mxu1 %v3070_v45  ;;  %v3296_v22 = vld [vmem:[#allocation6 + $0x18] sm:$0xff] }
  0x8b   :  { %2198 = vmatprep.subr.mxu0 %v2771_v0  ;;  %2233 = vmatprep.subr.mxu1 %v2771_v0 }
  0x8c   :  { %2199 = vmatpush3.msra.mxu0 %v2966_v24  ;;  %2234 = vmatpush3.msra.mxu1 %v3076_v46  ;;  %v3302_v24 = vld [vmem:[#allocation6 + $0x10] sm:$0xff] }
  0x8d   :  { %2200 = vmatprep.subr.mxu0 %v2771_v0  ;;  %2235 = vmatprep.subr.mxu1 %v2771_v0 }
  0x8e   :  { %2201 = vmatpush3.msra.mxu0 %v2974_v26  ;;  %2236 = vmatpush3.msra.mxu1 %v3082_v47  ;;  %v3308_v26 = vld [vmem:[#allocation6 + $0x8] sm:$0xff] }
  0x8f   :  { %2202 = vmatprep.subr.mxu0 %v2771_v0  ;;  %2237 = vmatprep.subr.mxu1 %v2771_v0 }
  0x90   :  { %2203 = vmatpush3.msra.mxu0 %v2982_v28  ;;  %2238 = vmatpush3.msra.mxu1 %v3088_v48  ;;  %v3316_v28 = vld [vmem:[#allocation6] sm:$0xff] }
  0x91   :  { %2204 = vmatprep.subr.mxu0 %v2771_v0  ;;  %2239 = vmatprep.subr.mxu1 %v2771_v0 }
  0x92   :  { %2205 = vmatpush3.msra.mxu0 %v2990_v30  ;;  %2240 = vmatpush3.msra.mxu1 %v3094_v49 }
  0x93   :  { %2206 = vmatprep.subr.mxu0 %v2771_v0  ;;  %2241 = vmatprep.subr.mxu1 %v2771_v0 }
  0x94   :  { %2207 = vmatpush3.msra.mxu0 %v2998_v32  ;;  %2208 = vmatprep.mubr.msk.f32.mxu0 %vm2772_vm0, %v2771_v0 }
  0x95   :  { %2242 = vmatpush3.msra.mxu1 %v3100_v50  ;;  %2243 = vmatprep.mubr.msk.f32.mxu1 %vm2772_vm0, %v2771_v0 }
  0x96   :  { %2209 = vmatmul.mubr.f32.vlgmr.msra.gmra.mxu0 %v1721_v53  ;;  %2244 = vmatmul.mubr.f32.vlgmr.msra.gmra.mxu1 %v1723_v54 }
  0x97   :  { %2246 = vmatprep.subr.mxu0 %v2771_v0  ;;  %2281 = vmatprep.subr.mxu1 %v2771_v0 }
  0x98   :  { %2278 = vmatprep.mubr.msk.f32.mxu0 %vm2772_vm0, %v2771_v0  ;;  %2313 = vmatprep.mubr.msk.f32.mxu1 %vm2772_vm0, %v2771_v0 }
  0x99   :  { %2247 = vmatpush3.msra.mxu0 %v3198_v55  ;;  %2282 = vmatpush3.msra.mxu1 %v3200_v56 }
  0x9a   :  { %2248 = vmatprep.subr.mxu0 %v2771_v0  ;;  %2283 = vmatprep.subr.mxu1 %v2771_v0 }
  0x9b   :  { %2249 = vmatpush3.msra.mxu0 %v3206_v57  ;;  %2284 = vmatpush3.msra.mxu1 %v3208_v58 }
  0x9c   :  { %2250 = vmatprep.subr.mxu0 %v2771_v0  ;;  %2285 = vmatprep.subr.mxu1 %v2771_v0 }
  0x9d   :  { %2251 = vmatpush3.msra.mxu0 %v3214_v59  ;;  %2286 = vmatpush3.msra.mxu1 %v3216_v60 }
  0x9e   :  { %2252 = vmatprep.subr.mxu0 %v2771_v0  ;;  %2287 = vmatprep.subr.mxu1 %v2771_v0 }
  0x9f   :  { %2253 = vmatpush3.msra.mxu0 %v3222_v61  ;;  %2288 = vmatpush3.msra.mxu1 %v3224_v62 }
  0xa0   :  { %2254 = vmatprep.subr.mxu0 %v2771_v0  ;;  %2289 = vmatprep.subr.mxu1 %v2771_v0 }
  0xa1   :  { %2255 = vmatpush3.msra.mxu0 %v3230_v63  ;;  %2290 = vmatpush3.msra.mxu1 %v3232_v1 }
  0xa2   :  { %2256 = vmatprep.subr.mxu0 %v2771_v0  ;;  %2291 = vmatprep.subr.mxu1 %v2771_v0 }
  0xa3   :  { %2257 = vmatpush3.msra.mxu0 %v3238_v2  ;;  %2292 = vmatpush3.msra.mxu1 %v3240_v3 }
  0xa4   :  { %2258 = vmatprep.subr.mxu0 %v2771_v0  ;;  %2293 = vmatprep.subr.mxu1 %v2771_v0 }
  0xa5   :  { %2259 = vmatpush3.msra.mxu0 %v3246_v4  ;;  %2294 = vmatpush3.msra.mxu1 %v3248_v5 }
  0xa6   :  { %2260 = vmatprep.subr.mxu0 %v2771_v0  ;;  %2295 = vmatprep.subr.mxu1 %v2771_v0 }
  0xa7   :  { %2261 = vmatpush3.msra.mxu0 %v3254_v6  ;;  %2296 = vmatpush3.msra.mxu1 %v3256_v7 }
  0xa8   :  { %2262 = vmatprep.subr.mxu0 %v2771_v0  ;;  %2297 = vmatprep.subr.mxu1 %v2771_v0 }
  0xa9   :  { %2263 = vmatpush3.msra.mxu0 %v3262_v8  ;;  %2298 = vmatpush3.msra.mxu1 %v3264_v9 }
  0xaa   :  { %2264 = vmatprep.subr.mxu0 %v2771_v0  ;;  %2299 = vmatprep.subr.mxu1 %v2771_v0 }
  0xab   :  { %2265 = vmatpush3.msra.mxu0 %v3270_v11  ;;  %2300 = vmatpush3.msra.mxu1 %v3272_v12 }
  0xac   :  { %2266 = vmatprep.subr.mxu0 %v2771_v0  ;;  %2301 = vmatprep.subr.mxu1 %v2771_v0 }
  0xad   :  { %2267 = vmatpush3.msra.mxu0 %v3278_v16  ;;  %2302 = vmatpush3.msra.mxu1 %v3280_v17 }
  0xae   :  { %2268 = vmatprep.subr.mxu0 %v2771_v0  ;;  %2303 = vmatprep.subr.mxu1 %v2771_v0 }
  0xaf   :  { %2269 = vmatpush3.msra.mxu0 %v3286_v19  ;;  %2304 = vmatpush3.msra.mxu1 %v3288_v20 }
  0xb0   :  { %2270 = vmatprep.subr.mxu0 %v2771_v0  ;;  %2305 = vmatprep.subr.mxu1 %v2771_v0 }
  0xb1   :  { %2271 = vmatpush3.msra.mxu0 %v3294_v21  ;;  %2306 = vmatpush3.msra.mxu1 %v3296_v22 }
  0xb2   :  { %2272 = vmatprep.subr.mxu0 %v2771_v0  ;;  %2307 = vmatprep.subr.mxu1 %v2771_v0 }
  0xb3   :  { %2273 = vmatpush3.msra.mxu0 %v3300_v23  ;;  %2308 = vmatpush3.msra.mxu1 %v3302_v24 }
  0xb4   :  { %2274 = vmatprep.subr.mxu0 %v2771_v0  ;;  %2309 = vmatprep.subr.mxu1 %v2771_v0 }
  0xb5   :  { %2275 = vmatpush3.msra.mxu0 %v3306_v25  ;;  %2310 = vmatpush3.msra.mxu1 %v3308_v26 }
  0xb6   :  { %2276 = vmatprep.subr.mxu0 %v2771_v0  ;;  %2311 = vmatprep.subr.mxu1 %v2771_v0 }
  0xb7   :  { %2277 = vmatpush3.msra.mxu0 %v3314_v27  ;;  %2312 = vmatpush3.msra.mxu1 %v3316_v28 }
  0xb8   :  { %2316 = vmatprep.subr.mxu0 %v2771_v0  ;;  %2351 = vmatprep.subr.mxu1 %v2771_v0 }
 0x112   :  { %v210_v10 = vpop.f32.mrf.mxu0 }
 0x113   :  { %v280_v13 = vpop.f32.mrf.mxu1 }
 0x114   :  { %v281_v14 = vadd.f32 %v280_v13, %v210_v10  ;;  %v2070_v15 = vpop.f32.mrf.mxu0 }
 0x115   :  { %v2105_v18 = vpop.f32.mrf.mxu1 }
 0x133   :  { %v369_v29 = vpop.f32.mrf.mxu0 }
 0x134   :  { %v373_v38 = vadd.f32 %v369_v29, %v281_v14 }
 0x135   :  { %v444_v30 = vpop.f32.mrf.mxu1  ;;  %v2140_v31 = vpop.f32.mrf.mxu0 }
 0x136   :  { %v1724_v31 = vld [vmem:[%s3679_s2] ss:$0 sm:$0xff] }
 0x137   :  { %v2175_v32 = vpop.f32.mrf.mxu1 }
 0x156   :  { %v514_v33 = vpop.f32.mrf.mxu0  ;;  %v586_v34 = vpop.f32.mrf.mxu1 }
 0x157   :  { %v515_v35 = vadd.f32 %v514_v33, %v444_v30 }
 0x158   :  { %v2210_v36 = vpop.f32.mrf.mxu0  ;;  %v2245_v37 = vpop.f32.mrf.mxu1 }
 0x159   :  { %v590_v39 = vadd.f32 %v586_v34, %v515_v35  ;;  %v1725_v34 = vld [vmem:[%s3680_s3] ss:$0 sm:$0xff] }
 0x15b   :  { %v591_v40 = vadd.f32 %v590_v39, %v373_v38 }
 0x15d   :  { %v592_v41 = vrot.slane %v591_v40, 4 }
 0x15f   :  { %v593_v42 = vadd.f32 %v592_v41, %v591_v40 }
 0x161   :  { %v594_v43 = vrot.slane %v593_v42, 2 }
 0x163   :  { %v595_v44 = vadd.f32 %v594_v43, %v593_v42  ;;  %v3332_v43 = vld [vmem:[#allocation6 + $0x178] sm:$0xff] }
 0x165   :  { %v596_v45 = vrot.slane %v595_v44, 1 }
 0x167   :  { %v597_v46 = vadd.f32 %v596_v45, %v595_v44 }
 0x169   :  { %v598_v47 = vmul.f32 0.0625, %v597_v46  ;;  %v3334_v46 = vld [vmem:[#allocation6 + $0x170] sm:$0xff] }
 0x16b   :  { %v599_v48 = vsub.f32 %v373_v38, %v598_v47  ;;  %v600_v49 = vsub.f32 %v590_v39, %v598_v47  ;;  %v3340_v47 = vld [vmem:[#allocation6 + $0x168] sm:$0xff] }
 0x16d   :  { %v601_v50 = vmul.f32 %v599_v48, %v599_v48  ;;  %v602_v51 = vmul.f32 %v600_v49, %v600_v49 }
 0x16f   :  { %v603_v52 = vadd.f32 %v602_v51, %v601_v50  ;;  %v1164_v50 = vld [vmem:[%s3686_s9] sm:$0xff]  ;;  %v1446_v51 = vld [vmem:[#allocation8 + $0x178] sm:$0xff] }
 0x171   :  { %v604_v53 = vrot.slane %v603_v52, 4 }
 0x173   :  { %v605_v54 = vadd.f32 %v604_v53, %v603_v52  ;;  %v1196_v52 = vld [vmem:[#allocation8 + $0x70] sm:$0xff] }
 0x174   :  { %v1445_v53 = vld [vmem:[#allocation8 + $0x170] sm:$0xff] }
 0x175   :  { %v606_v10 = vrot.slane %v605_v54, 2 }
 0x177   :  { %v607_v13 = vadd.f32 %v606_v10, %v605_v54  ;;  %v1195_v54 = vld [vmem:[#allocation8 + $0x68] sm:$0xff] }
 0x178   :  { %v1444_v10 = vld [vmem:[#allocation8 + $0x168] sm:$0xff] }
 0x179   :  { %v608_v15 = vrot.slane %v607_v13, 1 }
 0x17b   :  { %v609_v14 = vadd.f32 %v608_v15, %v607_v13  ;;  %v1194_v13 = vld [vmem:[#allocation8 + $0x60] sm:$0xff] }
 0x17c   :  { %v1443_v15 = vld [vmem:[#allocation8 + $0x160] sm:$0xff] }
 0x17d   :  { %v610_v18 = vmul.f32 0.0625, %v609_v14  ;;  %v1193_v14 = vld [vmem:[#allocation8 + $0x58] sm:$0xff] }
 0x17f   :  { %v611_v29 = vadd.f32 1e-05, %v610_v18  ;;  %v1442_v18 = vld [vmem:[#allocation8 + $0x158] sm:$0xff] }
 0x181   :  { %2674 = vrsqrt.f32 %v611_v29  ;;  %v1192_v29 = vld [vmem:[#allocation8 + $0x50] sm:$0xff] }
 0x18e   :  { %v2675_v30 = vpop.eup %2674 }
 0x18f   :  { %v613_v32 = vmul.f32 %v2675_v30, %v599_v48  ;;  %v614_v33 = vmul.f32 %v2675_v30, %v600_v49  ;;  %v3346_v48 = vld [vmem:[#allocation6 + $0x160] sm:$0xff]  ;;  %v1197_v49 = vld [vmem:[#allocation8 + $0x78] sm:$0xff]  ;;  %v1441_v30 = vld [vmem:[#allocation8 + $0x150] sm:$0xff] }
 0x191   :  { %v621_v35 = vmul.f32 %v1724_v31, %v613_v32  ;;  %v622_v36 = vmul.f32 %v1724_v31, %v614_v33  ;;  %v1191_v31 = vld [vmem:[#allocation8 + $0x48] sm:$0xff]  ;;  %v1190_v33 = vld [vmem:[#allocation8 + $0x40] sm:$0xff] }
 0x192   :  { %v1440_v32 = vld [vmem:[#allocation8 + $0x148] sm:$0xff] }
 0x193   :  { %v629_v37 = vadd.f32 %v1725_v34, %v621_v35  ;;  %v630_v38 = vadd.f32 %v1725_v34, %v622_v36  ;;  %v1439_v34 = vld [vmem:[#allocation8 + $0x140] sm:$0xff]  ;;  %v1189_v35 = vld [vmem:[#allocation8 + $0x38] sm:$0xff] }
 0x194   :  { %v1438_v36 = vld [vmem:[#allocation8 + $0x138] sm:$0xff] }
 0x195   :  { %v631_v39 = vmul.f32 0.01, %v629_v37  ;;  %v632_v40 = vmul.f32 0.01, %v630_v38 }
 0x197   :  { %v633_v41 = vmax.f32 %v629_v37, %v631_v39  ;;  %v634_v42 = vmax.f32 %v630_v38, %v632_v40  ;;  %v1188_v37 = vld [vmem:[#allocation8 + $0x30] sm:$0xff] }
 0x198   :  { %v1437_v38 = vld [vmem:[#allocation8 + $0x130] sm:$0xff] }
 0x199   :  { %635 = vst [vmem:[#allocation2 + $0x1] sm:$0xff] %v633_v41  ;;  %636 = vst [vmem:[#allocation2 + $0xb] sm:$0xff] %v634_v42  ;;  %v1187_v41 = vld [vmem:[#allocation8 + $0x28] sm:$0xff] }
 0x1a0   :  { %v657_v44 = vld [vmem:[#allocation2 + $0x1] ss:$2 sm:$0xf]  ;;  %v639_v45 = vld [vmem:[#allocation2] ss:$2 sm:$0xf] }
 0x1a1   :  { %2279 = vmatmul.mubr.f32.vlgmr.msra.gmra.mxu0 %v657_v44  ;;  %2314 = vmatmul.mubr.f32.vlgmr.msra.gmra.mxu1 %v639_v45 }
 0x1a2   :  { %2317 = vmatpush3.msra.mxu0 %v3332_v43  ;;  %2352 = vmatpush3.msra.mxu1 %v3198_v55  ;;  %v3352_v55 = vld [vmem:[#allocation6 + $0x158] sm:$0xff] }
 0x1a3   :  { %2318 = vmatprep.subr.mxu0 %v2771_v0  ;;  %2353 = vmatprep.subr.mxu1 %v2771_v0 }
 0x1a4   :  { %2319 = vmatpush3.msra.mxu0 %v3334_v46  ;;  %2354 = vmatpush3.msra.mxu1 %v3206_v57  ;;  %v3358_v57 = vld [vmem:[#allocation6 + $0x150] sm:$0xff] }
 0x1a5   :  { %2320 = vmatprep.subr.mxu0 %v2771_v0  ;;  %2355 = vmatprep.subr.mxu1 %v2771_v0 }
 0x1a6   :  { %2321 = vmatpush3.msra.mxu0 %v3340_v47  ;;  %2356 = vmatpush3.msra.mxu1 %v3214_v59  ;;  %v3364_v59 = vld [vmem:[#allocation6 + $0x148] sm:$0xff] }
 0x1a7   :  { %2322 = vmatprep.subr.mxu0 %v2771_v0  ;;  %2357 = vmatprep.subr.mxu1 %v2771_v0 }
 0x1a8   :  { %2323 = vmatpush3.msra.mxu0 %v3346_v48  ;;  %2358 = vmatpush3.msra.mxu1 %v3222_v61  ;;  %v3370_v61 = vld [vmem:[#allocation6 + $0x140] sm:$0xff] }
 0x1a9   :  { %2324 = vmatprep.subr.mxu0 %v2771_v0  ;;  %2359 = vmatprep.subr.mxu1 %v2771_v0 }
 0x1aa   :  { %2325 = vmatpush3.msra.mxu0 %v3352_v55  ;;  %2360 = vmatpush3.msra.mxu1 %v3230_v63  ;;  %v3376_v63 = vld [vmem:[#allocation6 + $0x138] sm:$0xff] }
 0x1ab   :  { %2326 = vmatprep.subr.mxu0 %v2771_v0  ;;  %2361 = vmatprep.subr.mxu1 %v2771_v0 }
 0x1ac   :  { %2327 = vmatpush3.msra.mxu0 %v3358_v57  ;;  %2362 = vmatpush3.msra.mxu1 %v3238_v2  ;;  %v3382_v2 = vld [vmem:[#allocation6 + $0x130] sm:$0xff] }
 0x1ad   :  { %2328 = vmatprep.subr.mxu0 %v2771_v0  ;;  %2363 = vmatprep.subr.mxu1 %v2771_v0 }
 0x1ae   :  { %2329 = vmatpush3.msra.mxu0 %v3364_v59  ;;  %2364 = vmatpush3.msra.mxu1 %v3246_v4  ;;  %v3388_v4 = vld [vmem:[#allocation6 + $0x128] sm:$0xff] }
 0x1af   :  { %2330 = vmatprep.subr.mxu0 %v2771_v0  ;;  %2365 = vmatprep.subr.mxu1 %v2771_v0 }
 0x1b0   :  { %2331 = vmatpush3.msra.mxu0 %v3370_v61  ;;  %2366 = vmatpush3.msra.mxu1 %v3254_v6  ;;  %v3394_v6 = vld [vmem:[#allocation6 + $0x120] sm:$0xff] }
 0x1b1   :  { %2332 = vmatprep.subr.mxu0 %v2771_v0  ;;  %2367 = vmatprep.subr.mxu1 %v2771_v0 }
 0x1b2   :  { %2333 = vmatpush3.msra.mxu0 %v3376_v63  ;;  %2368 = vmatpush3.msra.mxu1 %v3262_v8  ;;  %v3400_v8 = vld [vmem:[#allocation6 + $0x118] sm:$0xff] }
 0x1b3   :  { %2334 = vmatprep.subr.mxu0 %v2771_v0  ;;  %2369 = vmatprep.subr.mxu1 %v2771_v0 }
 0x1b4   :  { %2335 = vmatpush3.msra.mxu0 %v3382_v2  ;;  %2370 = vmatpush3.msra.mxu1 %v3270_v11  ;;  %v3406_v11 = vld [vmem:[#allocation6 + $0x110] sm:$0xff] }
 0x1b5   :  { %2336 = vmatprep.subr.mxu0 %v2771_v0  ;;  %2371 = vmatprep.subr.mxu1 %v2771_v0 }
 0x1b6   :  { %2337 = vmatpush3.msra.mxu0 %v3388_v4  ;;  %2372 = vmatpush3.msra.mxu1 %v3278_v16  ;;  %v3412_v16 = vld [vmem:[#allocation6 + $0x108] sm:$0xff] }
 0x1b7   :  { %2338 = vmatprep.subr.mxu0 %v2771_v0  ;;  %2373 = vmatprep.subr.mxu1 %v2771_v0 }
 0x1b8   :  { %2339 = vmatpush3.msra.mxu0 %v3394_v6  ;;  %2374 = vmatpush3.msra.mxu1 %v3286_v19  ;;  %v3418_v19 = vld [vmem:[#allocation6 + $0x100] sm:$0xff] }
 0x1b9   :  { %2340 = vmatprep.subr.mxu0 %v2771_v0  ;;  %2375 = vmatprep.subr.mxu1 %v2771_v0 }
 0x1ba   :  { %2341 = vmatpush3.msra.mxu0 %v3400_v8  ;;  %2376 = vmatpush3.msra.mxu1 %v3294_v21  ;;  %v816_v21 = vld [vmem:[#allocation2 + $0x2] ss:$2 sm:$0xf] }
 0x1bb   :  { %2342 = vmatprep.subr.mxu0 %v2771_v0  ;;  %2377 = vmatprep.subr.mxu1 %v2771_v0 }
 0x1bc   :  { %2343 = vmatpush3.msra.mxu0 %v3406_v11  ;;  %2378 = vmatpush3.msra.mxu1 %v3300_v23  ;;  %v908_v23 = vld [vmem:[#allocation2 + $0xb] ss:$2 sm:$0xf] }
 0x1bd   :  { %2344 = vmatprep.subr.mxu0 %v2771_v0  ;;  %2379 = vmatprep.subr.mxu1 %v2771_v0 }
 0x1be   :  { %2345 = vmatpush3.msra.mxu0 %v3412_v16  ;;  %2380 = vmatpush3.msra.mxu1 %v3306_v25  ;;  %v3442_v25 = vld [vmem:[#allocation3] sm:$0xff] }
 0x1bf   :  { %2346 = vmatprep.subr.mxu0 %v2771_v0  ;;  %2381 = vmatprep.subr.mxu1 %v2771_v0 }
 0x1c0   :  { %2347 = vmatpush3.msra.mxu0 %v3418_v19  ;;  %2348 = vmatprep.mubr.msk.f32.mxu0 %vm2772_vm0, %v2771_v0 }
 0x1c1   :  { %2382 = vmatpush3.msra.mxu1 %v3314_v27  ;;  %2383 = vmatprep.mubr.msk.f32.mxu1 %vm2772_vm0, %v2771_v0  ;;  %v1166_v27 = vld [vmem:[%s3685_s8 + $0x8] sm:$0xff] }
 0x1c2   :  { %2349 = vmatmul.mubr.f32.vlgmr.msra.gmra.mxu0 %v816_v21  ;;  %2384 = vmatmul.mubr.f32.vlgmr.msra.gmra.mxu1 %v908_v23 }
 0x1c3   :  { %2386 = vmatprep.subr.mxu0 %v2771_v0  ;;  %2421 = vmatprep.subr.mxu1 %v2771_v0 }
 0x1c4   :  { %2387 = vmatpush3.msra.mxu0 %v3200_v56  ;;  %2422 = vmatpush3.msra.mxu1 %v3332_v43  ;;  %v1050_v56 = vld [vmem:[#allocation2 + $0xc] ss:$2 sm:$0xf]  ;;  %v1436_v43 = vld [vmem:[#allocation8 + $0x128] sm:$0xff] }
 0x1c5   :  { %2388 = vmatprep.subr.mxu0 %v2771_v0  ;;  %2423 = vmatprep.subr.mxu1 %v2771_v0 }
 0x1c6   :  { %2389 = vmatpush3.msra.mxu0 %v3208_v58  ;;  %2424 = vmatpush3.msra.mxu1 %v3334_v46  ;;  %v1180_v58 = vld [vmem:[%s3685_s8 + $0x78] sm:$0xff] }
 0x1c7   :  { %2390 = vmatprep.subr.mxu0 %v2771_v0  ;;  %2425 = vmatprep.subr.mxu1 %v2771_v0  ;;  %v906_v0 = vld [vmem:[#allocation2 + $0xa] ss:$2 sm:$0xf]  ;;  %v1186_v46 = vld [vmem:[#allocation8 + $0x20] sm:$0xff] }
 0x1c8   :  { %2391 = vmatpush3.msra.mxu0 %v3216_v60  ;;  %2426 = vmatpush3.msra.mxu1 %v3340_v47  ;;  %v1179_v60 = vld [vmem:[%s3685_s8 + $0x70] sm:$0xff]  ;;  %v1435_v47 = vld [vmem:[#allocation8 + $0x120] sm:$0xff] }
 0x1c9   :  { %2392 = vmatprep.subr.mxu0 %v3442_v25  ;;  %2427 = vmatprep.subr.mxu1 %v3442_v25 }
 0x1ca   :  { %2393 = vmatpush3.msra.mxu0 %v3224_v62  ;;  %2428 = vmatpush3.msra.mxu1 %v3346_v48  ;;  %v1178_v62 = vld [vmem:[%s3685_s8 + $0x68] sm:$0xff]  ;;  %v1185_v48 = vld [vmem:[#allocation8 + $0x18] sm:$0xff] }
 0x1cb   :  { %2394 = vmatprep.subr.mxu0 %v3442_v25  ;;  %2429 = vmatprep.subr.mxu1 %v3442_v25 }
 0x1cc   :  { %2395 = vmatpush3.msra.mxu0 %v3232_v1  ;;  %2430 = vmatpush3.msra.mxu1 %v3352_v55  ;;  %v1177_v1 = vld [vmem:[%s3685_s8 + $0x60] sm:$0xff]  ;;  %v1434_v55 = vld [vmem:[#allocation8 + $0x118] sm:$0xff] }
 0x1cd   :  { %2396 = vmatprep.subr.mxu0 %v3442_v25  ;;  %2431 = vmatprep.subr.mxu1 %v3442_v25 }
 0x1ce   :  { %2397 = vmatpush3.msra.mxu0 %v3240_v3  ;;  %2432 = vmatpush3.msra.mxu1 %v3358_v57  ;;  %v1176_v3 = vld [vmem:[%s3685_s8 + $0x58] sm:$0xff]  ;;  %v1184_v57 = vld [vmem:[#allocation8 + $0x10] sm:$0xff] }
 0x1cf   :  { %2398 = vmatprep.subr.mxu0 %v3442_v25  ;;  %2433 = vmatprep.subr.mxu1 %v3442_v25 }
 0x1d0   :  { %2399 = vmatpush3.msra.mxu0 %v3248_v5  ;;  %2434 = vmatpush3.msra.mxu1 %v3364_v59  ;;  %v1175_v5 = vld [vmem:[%s3685_s8 + $0x50] sm:$0xff]  ;;  %v1433_v59 = vld [vmem:[#allocation8 + $0x110] sm:$0xff] }
 0x1d1   :  { %2400 = vmatprep.subr.mxu0 %v3442_v25  ;;  %2435 = vmatprep.subr.mxu1 %v3442_v25 }
 0x1d2   :  { %2401 = vmatpush3.msra.mxu0 %v3256_v7  ;;  %2436 = vmatpush3.msra.mxu1 %v3370_v61  ;;  %v1174_v7 = vld [vmem:[%s3685_s8 + $0x48] sm:$0xff]  ;;  %v1183_v61 = vld [vmem:[#allocation8 + $0x8] sm:$0xff] }
 0x1d3   :  { %2402 = vmatprep.subr.mxu0 %v3442_v25  ;;  %2437 = vmatprep.subr.mxu1 %v3442_v25 }
 0x1d4   :  { %2403 = vmatpush3.msra.mxu0 %v3264_v9  ;;  %2438 = vmatpush3.msra.mxu1 %v3376_v63  ;;  %v1173_v9 = vld [vmem:[%s3685_s8 + $0x40] sm:$0xff] }
 0x1d5   :  { %2404 = vmatprep.subr.mxu0 %v3442_v25  ;;  %2439 = vmatprep.subr.mxu1 %v3442_v25  ;;  %v1432_v63 = vld [vmem:[#allocation8 + $0x108] sm:$0xff] }
 0x1d6   :  { %2405 = vmatpush3.msra.mxu0 %v3272_v12  ;;  %2440 = vmatpush3.msra.mxu1 %v3382_v2  ;;  %v1172_v12 = vld [vmem:[%s3685_s8 + $0x38] sm:$0xff] }
 0x1d7   :  { %2406 = vmatprep.subr.mxu0 %v3442_v25  ;;  %2441 = vmatprep.subr.mxu1 %v3442_v25  ;;  %v1182_v2 = vld [vmem:[#allocation8] sm:$0xff] }
 0x1d8   :  { %2407 = vmatpush3.msra.mxu0 %v3280_v17  ;;  %2442 = vmatpush3.msra.mxu1 %v3388_v4  ;;  %v1171_v17 = vld [vmem:[%s3685_s8 + $0x30] sm:$0xff]  ;;  %v1431_v4 = vld [vmem:[#allocation8 + $0x100] sm:$0xff] }
 0x1d9   :  { %2408 = vmatprep.subr.mxu0 %v3442_v25  ;;  %2443 = vmatprep.subr.mxu1 %v3442_v25 }
 0x1da   :  { %2409 = vmatpush3.msra.mxu0 %v3288_v20  ;;  %2444 = vmatpush3.msra.mxu1 %v3394_v6  ;;  %v1170_v20 = vld [vmem:[%s3685_s8 + $0x28] sm:$0xff] }
 0x1db   :  { %2410 = vmatprep.subr.mxu0 %v3442_v25  ;;  %2445 = vmatprep.subr.mxu1 %v3442_v25 }
 0x1dc   :  { %2411 = vmatpush3.msra.mxu0 %v3296_v22  ;;  %2446 = vmatpush3.msra.mxu1 %v3400_v8  ;;  %v1169_v22 = vld [vmem:[%s3685_s8 + $0x20] sm:$0xff] }
 0x1dd   :  { %2412 = vmatprep.subr.mxu0 %v3442_v25  ;;  %2447 = vmatprep.subr.mxu1 %v3442_v25 }
 0x1de   :  { %2413 = vmatpush3.msra.mxu0 %v3302_v24  ;;  %2448 = vmatpush3.msra.mxu1 %v3406_v11  ;;  %v1168_v24 = vld [vmem:[%s3685_s8 + $0x18] sm:$0xff] }
 0x1df   :  { %2414 = vmatprep.subr.mxu0 %v3442_v25  ;;  %2449 = vmatprep.subr.mxu1 %v3442_v25 }
 0x1e0   :  { %2415 = vmatpush3.msra.mxu0 %v3308_v26  ;;  %2450 = vmatpush3.msra.mxu1 %v3412_v16  ;;  %v1167_v26 = vld [vmem:[%s3685_s8 + $0x10] sm:$0xff] }
 0x1e1   :  { %2416 = vmatprep.subr.mxu0 %v3442_v25  ;;  %2451 = vmatprep.subr.mxu1 %v3442_v25 }
 0x1e2   :  { %2417 = vmatpush3.msra.mxu0 %v3316_v28  ;;  %2418 = vmatprep.mubr.msk.f32.mxu0 %vm2772_vm0, %v3442_v25  ;;  %v1165_v28 = vld [vmem:[%s3685_s8] sm:$0xff] }
 0x1e3   :  { %2452 = vmatpush3.msra.mxu1 %v3418_v19  ;;  %2453 = vmatprep.mubr.msk.f32.mxu1 %vm2772_vm0, %v3442_v25 }
 0x1e4   :  { %2419 = vmatmul.mubr.f32.vlgmr.msra.gmra.mxu0 %v906_v0  ;;  %2454 = vmatmul.mubr.f32.vlgmr.msra.gmra.mxu1 %v1050_v56 }
 0x1e5   :  { %2491 = vmatprep.subr.mxu1 %v3442_v25  ;;  %2456 = vmatprep.subr.mxu0 %v3442_v25 }
 0x1e6   :  { %2523 = vmatprep.mubr.msk.f32.mxu1 %vm2772_vm0, %v3442_v25  ;;  %2488 = vmatprep.mubr.msk.f32.mxu0 %vm2772_vm0, %v3442_v25 }
 0x1e7   :  { %2492 = vmatpush3.msra.mxu1 %v1180_v58  ;;  %2457 = vmatpush3.msra.mxu0 %v1197_v49 }
 0x1e8   :  { %2493 = vmatprep.subr.mxu1 %v3442_v25  ;;  %2458 = vmatprep.subr.mxu0 %v3442_v25 }
 0x1e9   :  { %2494 = vmatpush3.msra.mxu1 %v1179_v60  ;;  %2459 = vmatpush3.msra.mxu0 %v1196_v52 }
 0x1ea   :  { %2495 = vmatprep.subr.mxu1 %v3442_v25  ;;  %2460 = vmatprep.subr.mxu0 %v3442_v25 }
 0x1eb   :  { %2496 = vmatpush3.msra.mxu1 %v1178_v62  ;;  %2461 = vmatpush3.msra.mxu0 %v1195_v54 }
 0x1ec   :  { %2497 = vmatprep.subr.mxu1 %v3442_v25  ;;  %2462 = vmatprep.subr.mxu0 %v3442_v25 }
 0x1ed   :  { %2498 = vmatpush3.msra.mxu1 %v1177_v1  ;;  %2463 = vmatpush3.msra.mxu0 %v1194_v13 }
 0x1ee   :  { %2499 = vmatprep.subr.mxu1 %v3442_v25  ;;  %2464 = vmatprep.subr.mxu0 %v3442_v25 }
 0x1ef   :  { %2500 = vmatpush3.msra.mxu1 %v1176_v3  ;;  %2465 = vmatpush3.msra.mxu0 %v1193_v14 }
 0x1f0   :  { %2501 = vmatprep.subr.mxu1 %v3442_v25  ;;  %2466 = vmatprep.subr.mxu0 %v3442_v25 }
 0x1f1   :  { %2502 = vmatpush3.msra.mxu1 %v1175_v5  ;;  %2467 = vmatpush3.msra.mxu0 %v1192_v29 }
 0x1f2   :  { %2503 = vmatprep.subr.mxu1 %v3442_v25  ;;  %2468 = vmatprep.subr.mxu0 %v3442_v25 }
 0x1f3   :  { %2504 = vmatpush3.msra.mxu1 %v1174_v7  ;;  %2469 = vmatpush3.msra.mxu0 %v1191_v31  ;;  %v1356_v31 = vld [vmem:[#allocation8 + $0xf8] sm:$0xff] }
 0x1f4   :  { %2505 = vmatprep.subr.mxu1 %v3442_v25  ;;  %2470 = vmatprep.subr.mxu0 %v3442_v25 }
 0x1f5   :  { %2506 = vmatpush3.msra.mxu1 %v1173_v9  ;;  %2471 = vmatpush3.msra.mxu0 %v1190_v33 }
 0x1f6   :  { %2507 = vmatprep.subr.mxu1 %v3442_v25  ;;  %2472 = vmatprep.subr.mxu0 %v3442_v25 }
 0x1f7   :  { %2508 = vmatpush3.msra.mxu1 %v1172_v12  ;;  %2473 = vmatpush3.msra.mxu0 %v1189_v35  ;;  %v1354_v35 = vld [vmem:[#allocation8 + $0xe8] sm:$0xff] }
 0x1f8   :  { %2509 = vmatprep.subr.mxu1 %v3442_v25  ;;  %2474 = vmatprep.subr.mxu0 %v3442_v25 }
 0x1f9   :  { %2510 = vmatpush3.msra.mxu1 %v1171_v17  ;;  %2475 = vmatpush3.msra.mxu0 %v1188_v37  ;;  %v1352_v37 = vld [vmem:[#allocation8 + $0xd8] sm:$0xff] }
 0x1fa   :  { %2511 = vmatprep.subr.mxu1 %v3442_v25  ;;  %2476 = vmatprep.subr.mxu0 %v3442_v25 }
 0x1fb   :  { %2512 = vmatpush3.msra.mxu1 %v1170_v20  ;;  %2477 = vmatpush3.msra.mxu0 %v1187_v41  ;;  %v1348_v41 = vld [vmem:[#allocation8 + $0xb8] sm:$0xff] }
 0x1fc   :  { %2513 = vmatprep.subr.mxu1 %v3442_v25  ;;  %2478 = vmatprep.subr.mxu0 %v3442_v25 }
 0x1fd   :  { %2514 = vmatpush3.msra.mxu1 %v1169_v22  ;;  %2479 = vmatpush3.msra.mxu0 %v1186_v46  ;;  %v1343_v46 = vld [vmem:[#allocation8 + $0x90] sm:$0xff] }
 0x1fe   :  { %2515 = vmatprep.subr.mxu1 %v3442_v25  ;;  %2480 = vmatprep.subr.mxu0 %v3442_v25 }
 0x1ff   :  { %2516 = vmatpush3.msra.mxu1 %v1168_v24  ;;  %2481 = vmatpush3.msra.mxu0 %v1185_v48  ;;  %v1341_v48 = vld [vmem:[#allocation8 + $0x80] sm:$0xff] }
 0x200   :  { %2517 = vmatprep.subr.mxu1 %v3442_v25  ;;  %2482 = vmatprep.subr.mxu0 %v3442_v25 }
 0x201   :  { %2518 = vmatpush3.msra.mxu1 %v1167_v26  ;;  %2483 = vmatpush3.msra.mxu0 %v1184_v57 }
 0x202   :  { %2519 = vmatprep.subr.mxu1 %v3442_v25  ;;  %2484 = vmatprep.subr.mxu0 %v3442_v25 }
 0x203   :  { %2520 = vmatpush3.msra.mxu1 %v1166_v27  ;;  %2485 = vmatpush3.msra.mxu0 %v1183_v61 }
 0x204   :  { %2521 = vmatprep.subr.mxu1 %v3442_v25  ;;  %2486 = vmatprep.subr.mxu0 %v3442_v25 }
 0x205   :  { %2522 = vmatpush3.msra.mxu1 %v1165_v28  ;;  %2487 = vmatpush3.msra.mxu0 %v1182_v2 }
 0x206   :  { %2561 = vmatprep.subr.mxu1 %v3442_v25  ;;  %2524 = vmatmul.mubr.f32.vlgmr.msra.gmra.mxu1 %v1164_v50 }
 0x207   :  { %2562 = vmatpush3.msra.mxu1 %v1446_v51  ;;  %2526 = vmatprep.subr.mxu0 %v3442_v25 }
 0x208   :  { %2563 = vmatprep.subr.mxu1 %v3442_v25  ;;  %2593 = vmatprep.mubr.msk.f32.mxu1 %vm2772_vm0, %v3442_v25 }
 0x209   :  { %2564 = vmatpush3.msra.mxu1 %v1445_v53 }
 0x20a   :  { %2565 = vmatprep.subr.mxu1 %v3442_v25 }
 0x20b   :  { %2566 = vmatpush3.msra.mxu1 %v1444_v10  ;;  %v1726_v10 = vld [vmem:[%s3682_s5] ss:$0 sm:$0xff] }
 0x20c   :  { %2567 = vmatprep.subr.mxu1 %v3442_v25 }
 0x20d   :  { %2568 = vmatpush3.msra.mxu1 %v1443_v15  ;;  %v1727_v15 = vld [vmem:[%s3683_s6] ss:$0 sm:$0xff] }
 0x20e   :  { %2569 = vmatprep.subr.mxu1 %v3442_v25 }
 0x20f   :  { %2570 = vmatpush3.msra.mxu1 %v1442_v18 }
 0x210   :  { %2571 = vmatprep.subr.mxu1 %v3442_v25 }
 0x211   :  { %2572 = vmatpush3.msra.mxu1 %v1441_v30 }
 0x212   :  { %2573 = vmatprep.subr.mxu1 %v3442_v25 }
 0x213   :  { %2574 = vmatpush3.msra.mxu1 %v1440_v32 }
 0x214   :  { %2575 = vmatprep.subr.mxu1 %v3442_v25 }
 0x215   :  { %2576 = vmatpush3.msra.mxu1 %v1439_v34  ;;  %v1355_v34 = vld [vmem:[#allocation8 + $0xf0] sm:$0xff] }
 0x216   :  { %2577 = vmatprep.subr.mxu1 %v3442_v25 }
 0x217   :  { %2578 = vmatpush3.msra.mxu1 %v1438_v36  ;;  %v1353_v36 = vld [vmem:[#allocation8 + $0xe0] sm:$0xff] }
 0x218   :  { %2579 = vmatprep.subr.mxu1 %v3442_v25 }
 0x219   :  { %2580 = vmatpush3.msra.mxu1 %v1437_v38  ;;  %v1351_v38 = vld [vmem:[#allocation8 + $0xd0] sm:$0xff] }
 0x21a   :  { %2581 = vmatprep.subr.mxu1 %v3442_v25 }
 0x21b   :  { %2582 = vmatpush3.msra.mxu1 %v1436_v43  ;;  %v1346_v43 = vld [vmem:[#allocation8 + $0xa8] sm:$0xff] }
 0x21c   :  { %2583 = vmatprep.subr.mxu1 %v3442_v25 }
 0x21d   :  { %2584 = vmatpush3.msra.mxu1 %v1435_v47  ;;  %v1342_v47 = vld [vmem:[#allocation8 + $0x88] sm:$0xff] }
 0x21e   :  { %2585 = vmatprep.subr.mxu1 %v3442_v25 }
 0x21f   :  { %2586 = vmatpush3.msra.mxu1 %v1434_v55  ;;  %v1536_v55 = vld [vmem:[#allocation8 + $0x1f8] sm:$0xff] }
 0x220   :  { %2587 = vmatprep.subr.mxu1 %v3442_v25 }
 0x221   :  { %2588 = vmatpush3.msra.mxu1 %v1433_v59  ;;  %v1535_v59 = vld [vmem:[#allocation8 + $0x1f0] sm:$0xff] }
 0x222   :  { %2589 = vmatprep.subr.mxu1 %v3442_v25 }
 0x223   :  { %2590 = vmatpush3.msra.mxu1 %v1432_v63  ;;  %v1534_v63 = vld [vmem:[#allocation8 + $0x1e8] sm:$0xff] }
 0x224   :  { %2591 = vmatprep.subr.mxu1 %v3442_v25 }
 0x225   :  { %2592 = vmatpush3.msra.mxu1 %v1431_v4  ;;  %v1533_v4 = vld [vmem:[#allocation8 + $0x1e0] sm:$0xff] }
 0x226   :  { %2631 = vmatprep.subr.mxu1 %v3442_v25 }
 0x261   :  { %v741_v39 = vpop.f32.mrf.mxu0  ;;  %v811_v40 = vpop.f32.mrf.mxu1 }
 0x262   :  { %v812_v42 = vadd.f32 %v811_v40, %v741_v39  ;;  %v1350_v39 = vld [vmem:[#allocation8 + $0xc8] sm:$0xff]  ;;  %v1349_v40 = vld [vmem:[#allocation8 + $0xc0] sm:$0xff] }
 0x263   :  { %v2280_v44 = vpop.f32.mrf.mxu0  ;;  %v2315_v45 = vpop.f32.mrf.mxu1 }
 0x264   :  { %v1345_v44 = vld [vmem:[#allocation8 + $0xa0] sm:$0xff]  ;;  %v1344_v45 = vld [vmem:[#allocation8 + $0x98] sm:$0xff] }
 0x282   :  { %v900_v6 = vpop.f32.mrf.mxu0  ;;  %v975_v8 = vpop.f32.mrf.mxu1 }
 0x283   :  { %v904_v60 = vadd.f32 %v900_v6, %v812_v42  ;;  %v1347_v42 = vld [vmem:[#allocation8 + $0xb0] sm:$0xff]  ;;  %v1532_v6 = vld [vmem:[#allocation8 + $0x1d8] sm:$0xff] }
 0x284   :  { %v2350_v11 = vpop.f32.mrf.mxu0  ;;  %v2385_v16 = vpop.f32.mrf.mxu1 }
 0x285   :  { %v1530_v11 = vld [vmem:[#allocation8 + $0x1c8] sm:$0xff]  ;;  %v1529_v16 = vld [vmem:[#allocation8 + $0x1c0] sm:$0xff] }
 0x2a4   :  { %v1045_v19 = vpop.f32.mrf.mxu0  ;;  %v1117_v21 = vpop.f32.mrf.mxu1 }
 0x2a5   :  { %v1046_v23 = vadd.f32 %v1045_v19, %v975_v8  ;;  %v1531_v8 = vld [vmem:[#allocation8 + $0x1d0] sm:$0xff]  ;;  %v1528_v19 = vld [vmem:[#allocation8 + $0x1b8] sm:$0xff] }
 0x2a6   :  { %v2420_v0 = vpop.f32.mrf.mxu0  ;;  %v2455_v56 = vpop.f32.mrf.mxu1 }
 0x2a7   :  { %v1121_v58 = vadd.f32 %v1117_v21, %v1046_v23  ;;  %v1527_v21 = vld [vmem:[#allocation8 + $0x1b0] sm:$0xff]  ;;  %v1526_v23 = vld [vmem:[#allocation8 + $0x1a8] sm:$0xff]  ;;  %v1525_v0 = vld [vmem:[#allocation8 + $0x1a0] sm:$0xff] }
 0x2a8   :  { %v1524_v56 = vld [vmem:[#allocation8 + $0x198] sm:$0xff] }
 0x2a9   :  { %v1123_v62 = vrot.slane %v1121_v58, 4  ;;  %v1523_v58 = vld [vmem:[#allocation8 + $0x190] sm:$0xff] }
 0x2ab   :  { %v1126_v1 = vsel %vm1125_vm1, %v904_v60, %v1123_v62  ;;  %v1522_v60 = vld [vmem:[#allocation8 + $0x188] sm:$0xff]  ;;  %v1521_v62 = vld [vmem:[#allocation8 + $0x180] sm:$0xff] }
 0x2ac   :  { %v1127_v3 = vrot.slane %v1126_v1, 4 }
 0x2ae   :  { %v1128_v5 = vadd.f32 %v1127_v3, %v1126_v1  ;;  %v1633_v3 = vld [vmem:[#allocation9 + $0x78] sm:$0xff] }
 0x2b0   :  { %v1129_v7 = vrot.slane %v1128_v5, 2 }
 0x2b2   :  { %v1130_v9 = vadd.f32 %v1129_v7, %v1128_v5  ;;  %v1632_v5 = vld [vmem:[#allocation9 + $0x70] sm:$0xff]  ;;  %v1631_v7 = vld [vmem:[#allocation9 + $0x68] sm:$0xff] }
 0x2b4   :  { %v1131_v12 = vrot.slane %v1130_v9, 1 }
 0x2b6   :  { %v1132_v17 = vadd.f32 %v1131_v12, %v1130_v9  ;;  %v1630_v9 = vld [vmem:[#allocation9 + $0x60] sm:$0xff]  ;;  %v1629_v12 = vld [vmem:[#allocation9 + $0x58] sm:$0xff] }
 0x2b8   :  { %v1133_v20 = vmul.f32 0.125, %v1132_v17  ;;  %v1628_v17 = vld [vmem:[#allocation9 + $0x50] sm:$0xff] }
 0x2ba   :  { %v1134_v22 = vsub.f32 %v1126_v1, %v1133_v20  ;;  %v1627_v20 = vld [vmem:[#allocation9 + $0x48] sm:$0xff] }
 0x2bc   :  { %v1135_v24 = vmul.f32 %v1134_v22, %v1134_v22 }
 0x2be   :  { %v1136_v26 = vrot.slane %v1135_v24, 4 }
 0x2c0   :  { %v1137_v27 = vadd.f32 %v1136_v26, %v1135_v24  ;;  %v1625_v24 = vld [vmem:[#allocation9 + $0x38] sm:$0xff]  ;;  %v1624_v26 = vld [vmem:[#allocation9 + $0x30] sm:$0xff] }
 0x2c2   :  { %v1138_v28 = vrot.slane %v1137_v27, 2 }
 0x2c4   :  { %v1139_v49 = vadd.f32 %v1138_v28, %v1137_v27  ;;  %v1623_v27 = vld [vmem:[#allocation9 + $0x28] sm:$0xff]  ;;  %v1622_v28 = vld [vmem:[#allocation9 + $0x20] sm:$0xff] }
 0x2c6   :  { %v1140_v50 = vrot.slane %v1139_v49, 1  ;;  %v3635_v61 = vpop.f32.mrf.mxu1 }
 0x2c8   :  { %v1141_v51 = vadd.f32 %v1140_v50, %v1139_v49  ;;  %v2525_v2 = vpop.f32.mrf.mxu1  ;;  %v1621_v49 = vld [vmem:[#allocation9 + $0x18] sm:$0xff]  ;;  %v1620_v50 = vld [vmem:[#allocation9 + $0x10] sm:$0xff] }
 0x2ca   :  { %v1142_v52 = vmul.f32 0.125, %v1141_v51  ;;  %v1619_v51 = vld [vmem:[#allocation9 + $0x8] sm:$0xff] }
 0x2cc   :  { %v1143_v53 = vadd.f32 1e-05, %v1142_v52  ;;  %v1618_v52 = vld [vmem:[#allocation9] sm:$0xff] }
 0x2ce   :  { %2676 = vrsqrt.f32 %v1143_v53 }
 0x2db   :  { %v2677_v54 = vpop.eup %2676 }
 0x2dc   :  { %v1145_v13 = vmul.f32 %v2677_v54, %v1134_v22  ;;  %v1626_v22 = vld [vmem:[#allocation9 + $0x40] sm:$0xff] }
 0x2de   :  { %v1152_v14 = vmul.f32 %v1726_v10, %v1145_v13 }
 0x2e0   :  { %v1159_v18 = vadd.f32 %v1727_v15, %v1152_v14 }
 0x2e2   :  { %v1160_v29 = vmul.f32 0.01, %v1159_v18 }
 0x2e4   :  { %v1161_v30 = vmax.f32 %v1159_v18, %v1160_v29 }
 0x2e6   :  { %1162 = vst [vmem:[#allocation3] sm:$0xff] %v1161_v30  }
 0x2ed   :  { %v1181_v32 = vld [vmem:[#allocation3] ss:$4 sm:$0xff]  ;;  %v1429_v33 = vld [vmem:[#allocation3 + $0x2] ss:$4 sm:$0xff]  ;;  %v1339_v57 = vld [vmem:[#allocation3 + $0x1] ss:$4 sm:$0xff] }
 0x2ee   :  { %2489 = vmatmul.mubr.f32.vlgmr.msra.gmra.mxu0 %v1181_v32  ;;  %2594 = vmatmul.mubr.f32.vlgmr.msra.gmra.mxu1 %v1429_v33  ;;  %v1519_v1 = vld [vmem:[#allocation3 + $0x3] ss:$4 sm:$0xff]  ;;  %v1728_v32 = vld [vmem:[%s3687_s10] ss:$0 sm:$0xff] }
 0x2ef   :  { %2527 = vmatpush3.msra.mxu0 %v1356_v31  ;;  %2558 = vmatprep.mubr.msk.f32.mxu0 %vm2772_vm0, %v3442_v25 }
 0x2f0   :  { %2528 = vmatprep.subr.mxu0 %v3442_v25  ;;  %2663 = vmatprep.mubr.msk.f32.mxu1 %vm2772_vm0, %v3442_v25 }
 0x2f1   :  { %2529 = vmatpush3.msra.mxu0 %v1355_v34  ;;  %2632 = vmatpush3.msra.mxu1 %v1633_v3 }
 0x2f2   :  { %2530 = vmatprep.subr.mxu0 %v3442_v25  ;;  %2633 = vmatprep.subr.mxu1 %v3442_v25 }
 0x2f3   :  { %2531 = vmatpush3.msra.mxu0 %v1354_v35  ;;  %2634 = vmatpush3.msra.mxu1 %v1632_v5 }
 0x2f4   :  { %2532 = vmatprep.subr.mxu0 %v3442_v25  ;;  %2635 = vmatprep.subr.mxu1 %v3442_v25 }
 0x2f5   :  { %2533 = vmatpush3.msra.mxu0 %v1353_v36  ;;  %2636 = vmatpush3.msra.mxu1 %v1631_v7 }
 0x2f6   :  { %2534 = vmatprep.subr.mxu0 %v3442_v25  ;;  %2637 = vmatprep.subr.mxu1 %v3442_v25 }
 0x2f7   :  { %2535 = vmatpush3.msra.mxu0 %v1352_v37  ;;  %2638 = vmatpush3.msra.mxu1 %v1630_v9  ;;  %v1729_v37 = vld [vmem:[%s3689_s12] ss:$0 sm:$0xff] }
 0x2f8   :  { %2536 = vmatprep.subr.mxu0 %v3442_v25  ;;  %2639 = vmatprep.subr.mxu1 %v3442_v25 }
 0x2f9   :  { %2537 = vmatpush3.msra.mxu0 %v1351_v38  ;;  %2640 = vmatpush3.msra.mxu1 %v1629_v12 }
 0x2fa   :  { %2538 = vmatprep.subr.mxu0 %v3442_v25  ;;  %2641 = vmatprep.subr.mxu1 %v3442_v25 }
 0x2fb   :  { %2539 = vmatpush3.msra.mxu0 %v1350_v39  ;;  %2642 = vmatpush3.msra.mxu1 %v1628_v17 }
 0x2fc   :  { %2540 = vmatprep.subr.mxu0 %v3442_v25  ;;  %2643 = vmatprep.subr.mxu1 %v3442_v25 }
 0x2fd   :  { %2541 = vmatpush3.msra.mxu0 %v1349_v40  ;;  %2644 = vmatpush3.msra.mxu1 %v1627_v20 }
 0x2fe   :  { %2542 = vmatprep.subr.mxu0 %v3442_v25  ;;  %2645 = vmatprep.subr.mxu1 %v3442_v25 }
 0x2ff   :  { %2543 = vmatpush3.msra.mxu0 %v1348_v41  ;;  %2646 = vmatpush3.msra.mxu1 %v1626_v22 }
 0x300   :  { %2544 = vmatprep.subr.mxu0 %v3442_v25  ;;  %2647 = vmatprep.subr.mxu1 %v3442_v25 }
 0x301   :  { %2545 = vmatpush3.msra.mxu0 %v1347_v42  ;;  %2648 = vmatpush3.msra.mxu1 %v1625_v24 }
 0x302   :  { %2546 = vmatprep.subr.mxu0 %v3442_v25  ;;  %2649 = vmatprep.subr.mxu1 %v3442_v25 }
 0x303   :  { %2547 = vmatpush3.msra.mxu0 %v1346_v43  ;;  %2650 = vmatpush3.msra.mxu1 %v1624_v26 }
 0x304   :  { %2548 = vmatprep.subr.mxu0 %v3442_v25  ;;  %2651 = vmatprep.subr.mxu1 %v3442_v25 }
 0x305   :  { %2549 = vmatpush3.msra.mxu0 %v1345_v44  ;;  %2652 = vmatpush3.msra.mxu1 %v1623_v27 }
 0x306   :  { %2550 = vmatprep.subr.mxu0 %v3442_v25  ;;  %2653 = vmatprep.subr.mxu1 %v3442_v25 }
 0x307   :  { %2551 = vmatpush3.msra.mxu0 %v1344_v45  ;;  %2654 = vmatpush3.msra.mxu1 %v1622_v28 }
 0x308   :  { %2552 = vmatprep.subr.mxu0 %v3442_v25  ;;  %2655 = vmatprep.subr.mxu1 %v3442_v25 }
 0x309   :  { %2553 = vmatpush3.msra.mxu0 %v1343_v46  ;;  %2656 = vmatpush3.msra.mxu1 %v1621_v49 }
 0x30a   :  { %2554 = vmatprep.subr.mxu0 %v3442_v25  ;;  %2657 = vmatprep.subr.mxu1 %v3442_v25 }
 0x30b   :  { %2555 = vmatpush3.msra.mxu0 %v1342_v47  ;;  %2658 = vmatpush3.msra.mxu1 %v1620_v50 }
 0x30c   :  { %2556 = vmatprep.subr.mxu0 %v3442_v25  ;;  %2659 = vmatprep.subr.mxu1 %v3442_v25 }
 0x30d   :  { %2557 = vmatpush3.msra.mxu0 %v1341_v48  ;;  %2660 = vmatpush3.msra.mxu1 %v1619_v51 }
 0x30e   :  { %2559 = vmatmul.mubr.f32.vlgmr.msra.gmra.mxu0 %v1339_v57  ;;  %2596 = vmatprep.subr.mxu0 %v3442_v25 }
 0x30f   :  { %2597 = vmatpush3.msra.mxu0 %v1536_v55  ;;  %2628 = vmatprep.mubr.msk.f32.mxu0 %vm2772_vm0, %v3442_v25 }
 0x310   :  { %2598 = vmatprep.subr.mxu0 %v3442_v25  ;;  %2661 = vmatprep.subr.mxu1 %v3442_v25 }
 0x311   :  { %2599 = vmatpush3.msra.mxu0 %v1535_v59  ;;  %2662 = vmatpush3.msra.mxu1 %v1618_v52 }
 0x312   :  { %2600 = vmatprep.subr.mxu0 %v3442_v25 }
 0x313   :  { %2601 = vmatpush3.msra.mxu0 %v1534_v63 }
 0x314   :  { %2602 = vmatprep.subr.mxu0 %v3442_v25 }
 0x315   :  { %2603 = vmatpush3.msra.mxu0 %v1533_v4 }
 0x316   :  { %2604 = vmatprep.subr.mxu0 %v3442_v25 }
 0x317   :  { %2605 = vmatpush3.msra.mxu0 %v1532_v6 }
 0x318   :  { %2606 = vmatprep.subr.mxu0 %v3442_v25 }
 0x319   :  { %2607 = vmatpush3.msra.mxu0 %v1531_v8 }
 0x31a   :  { %2608 = vmatprep.subr.mxu0 %v3442_v25 }
 0x31b   :  { %2609 = vmatpush3.msra.mxu0 %v1530_v11 }
 0x31c   :  { %2610 = vmatprep.subr.mxu0 %v3442_v25 }
 0x31d   :  { %2611 = vmatpush3.msra.mxu0 %v1529_v16 }
 0x31e   :  { %2612 = vmatprep.subr.mxu0 %v3442_v25 }
 0x31f   :  { %2613 = vmatpush3.msra.mxu0 %v1528_v19 }
 0x320   :  { %2614 = vmatprep.subr.mxu0 %v3442_v25 }
 0x321   :  { %2615 = vmatpush3.msra.mxu0 %v1527_v21 }
 0x322   :  { %2616 = vmatprep.subr.mxu0 %v3442_v25 }
 0x323   :  { %2617 = vmatpush3.msra.mxu0 %v1526_v23 }
 0x324   :  { %2618 = vmatprep.subr.mxu0 %v3442_v25 }
 0x325   :  { %2619 = vmatpush3.msra.mxu0 %v1525_v0 }
 0x326   :  { %2620 = vmatprep.subr.mxu0 %v3442_v25 }
 0x327   :  { %2621 = vmatpush3.msra.mxu0 %v1524_v56 }
 0x328   :  { %2622 = vmatprep.subr.mxu0 %v3442_v25 }
 0x329   :  { %2623 = vmatpush3.msra.mxu0 %v1523_v58 }
 0x32a   :  { %2624 = vmatprep.subr.mxu0 %v3442_v25 }
 0x32b   :  { %2625 = vmatpush3.msra.mxu0 %v1522_v60 }
 0x32c   :  { %2626 = vmatprep.subr.mxu0 %v3442_v25 }
 0x32d   :  { %2627 = vmatpush3.msra.mxu0 %v1521_v62 }
 0x32e   :  { %2629 = vmatmul.mubr.f32.vlgmr.msra.gmra.mxu0 %v1519_v1 }
 0x3ae   :  { %v1264_v53 = vpop.f32.mrf.mxu0  ;;  %v1513_v54 = vpop.f32.mrf.mxu1 }
 0x3af   :  { %v1335_v18 = vadd.f32 %v3635_v61, %v1264_v53 }
 0x3b0   :  { %v2490_v10 = vpop.f32.mrf.mxu0  ;;  %v2595_v13 = vpop.f32.mrf.mxu1 }
 0x3ce   :  { %v1423_v15 = vpop.f32.mrf.mxu0 }
 0x3cf   :  { %v1427_v29 = vadd.f32 %v1423_v15, %v1335_v18 }
 0x3d0   :  { %v2560_v14 = vpop.f32.mrf.mxu0 }
 0x3d1   :  { %v1517_v30 = vadd.f32 %v1513_v54, %v1427_v29 }
 0x3ee   :  { %v1603_v31 = vpop.f32.mrf.mxu0 }
 0x3ef   :  { %v1607_v33 = vadd.f32 %v1603_v31, %v1517_v30 }
 0x3f0   :  { %v2630_v34 = vpop.f32.mrf.mxu0 }
 0x3f1   :  { %v1615_v25 = vadd.f32 %v1728_v32, %v1607_v33 }
 0x3f3   :  { %v1616_v35 = vmul.f32 0.01, %v1615_v25 }
 0x3f5   :  { %v1617_v36 = vmax.f32 %v1615_v25, %v1616_v35 }
 0x3f7   :  { %2664 = vmatmul.mubr.f32.vlgmr.msra.gmra.mxu1 %v1617_v36 }
 0x4b7   :  { %v1707_v38 = vpop.f32.mrf.mxu1 }
 0x4b8   :  { %v1708_v39 = vadd.f32 %v1729_v37, %v1707_v38 }
 0x4b9   :  { %v2665_v40 = vpop.f32.mrf.mxu1 }
 0x4ba   :  { %1711 = vst [vmem:[%s3690_s13] sm:$0xff] %v1708_v39 }
 0x4bb   :  { %1716 = vsyncpa [#allocation5], 1 }
 0x4bc   :  { %1717 = vsyncpa [#allocation7], 1 }
 0x4bd   :  { %1718 = vsyncpa [#allocation10], 1 }

</bundles_post_ra>
